<compile_context>
chip_gen: v7x
topology: tpu7x:2x2x1
jax: 0.10.0
libtpu: 0.0.40
codegen_flags: <defaults>
</compile_context>

<pallas_src>
import jax
import jax.numpy as jnp
from jax import lax
from jax.experimental import pallas as pl
from jax.experimental.pallas import tpu as pltpu


def _lstm_bayes_kernel(x_ref, wx_ref, wh_ref, b_ref, wlin_ref, blin_ref,
                       out_ref, pred_ref, h_sc, c_sc, gx_sc):
    seq_blk = pl.program_id(1)                     # inner, "arbitrary" axis
    t_block, _, in_f = x_ref.shape
    H = h_sc.shape[-1]

    @pl.when(seq_blk == 0)
    def _init():
        h_sc[...] = jnp.zeros_like(h_sc)
        c_sc[...] = jnp.zeros_like(c_sc)
        # Defensive init; the real value is written on the last seq block.
        pred_ref[...] = jnp.zeros_like(pred_ref)

    # ---- hoisted once per grid invocation (never per timestep) ------------
    wh_f32 = wh_ref[...].astype(jnp.float32)       # (bt, H, 4H)
    wx_f32 = wx_ref[...].astype(jnp.float32)       # (bt, in_f, 4H)
    bias = b_ref[...].astype(jnp.float32)          # (bt, 4H)

    # Time-parallel input projection for the whole block (no sequential
    # dependence): gx[t] = x[t] @ Wx + b, staged into VMEM scratch.
    # TODO(synk): for large in_features map this onto the MXU as a batched
    # dot_general instead of the short FMA sweep below.
    x_blk = x_ref[...].astype(jnp.float32)         # (T, bt, in_f)
    gx = jnp.broadcast_to(bias[None, :, :], (t_block,) + bias.shape)
    for i in range(in_f):
        gx = gx + x_blk[:, :, i:i + 1] * wx_f32[None, :, i, :]
    gx_sc[...] = gx                                # (T, bt, 4H)

    dnums = (((2,), (1,)), ((0,), (0,)))           # contract H, batch over bt

    def step(t, carry):
        h, c = carry                               # (bt, H) f32
        # Recurrent contraction on the MXU: per-batch (1, H) @ (H, 4H).
        hk = lax.dot_general(h[:, None, :], wh_f32, dnums,
                             precision=lax.Precision.HIGHEST,
                             preferred_element_type=jnp.float32)[:, 0, :]
        gates = gx_sc[t] + hk                      # (bt, 4H) lane-dense slab
        i_g = jax.nn.sigmoid(gates[:, 0 * H:1 * H])
        f_g = jax.nn.sigmoid(gates[:, 1 * H:2 * H])
        g_g = jnp.tanh(gates[:, 2 * H:3 * H])
        o_g = jax.nn.sigmoid(gates[:, 3 * H:4 * H])
        c_new = f_g * c + i_g * g_g
        h_new = o_g * jnp.tanh(c_new)
        # TODO(synk): v5e: stage the block's hidden states as a lane-dense
        # (bt, T*H) slab and write back once (single vector-store slot there).
        out_ref[t] = h_new.astype(out_ref.dtype)   # resident VMEM out block
        return h_new, c_new

    h_fin, c_fin = lax.fori_loop(0, t_block, step, (h_sc[...], c_sc[...]),
                                 unroll=min(8, t_block))
    h_sc[...] = h_fin
    c_sc[...] = c_fin

    @pl.when(seq_blk == pl.num_programs(1) - 1)
    def _head():
        w = wlin_ref[...].astype(jnp.float32)      # (1, H)
        pred_ref[...] = (jnp.sum(h_fin * w, axis=-1, keepdims=True)
                         + blin_ref[0, 0]).astype(pred_ref.dtype)


# ------------------------------ tiling helpers ------------------------------

def _pick_time_block(seq_len, max_block=32):
    tb = min(seq_len, max_block)
    while seq_len % tb:
        tb -= 1
    return tb


def _tpu_hw_info():
    """(vmem_capacity_bytes, tensorcores_per_chip) with conservative fallbacks."""
    vmem_cap = 64 * 1024 * 1024       # v7x per-TC capacity: safe lower bound
    n_cores = 1                       # v5e / v6e: single TensorCore
    try:
        info = pltpu.get_tpu_info()
        vmem_cap = int(getattr(info, "vmem_capacity_bytes", vmem_cap))
        for attr in ("tensor_cores_per_chip", "num_tensorcores",
                     "num_cores", "core_count"):
            v = getattr(info, attr, None)
            if v:
                n_cores = int(v)
                break
    except Exception:
        pass
    return vmem_cap, n_cores


def _vmem_estimate(time_block, batch_block, in_f, H, w_bytes=2, out_bytes=4):
    """Per-invocation VMEM footprint: double-buffered pipeline blocks + scratch
    + the hoisted f32 temporaries."""
    fourH = 4 * H
    buffered = 2 * (time_block * batch_block * in_f * 4          # x
                    + batch_block * in_f * fourH * w_bytes       # wx
                    + batch_block * H * fourH * w_bytes          # wh
                    + batch_block * fourH * w_bytes              # b
                    + time_block * batch_block * H * out_bytes   # out
                    + batch_block * 4                            # pred
                    + H * 4)                                     # w_lin
    scratch = (2 * batch_block * H                               # h, c carries
               + time_block * batch_block * fourH) * 4           # gx scratch
    temps = (batch_block * (H + in_f) * fourH                    # hoisted casts
             + time_block * batch_block * fourH) * 4             # gx value
    return buffered + scratch + temps


# --------------------------------- wrapper ----------------------------------

def lstm_bayes_forward(x, wx, wh, b, w_lin, b_lin, *, time_block=None,
                       batch_block=None, out_dtype=jnp.float32):
    """x:(S,B,F) f32, wx:(B,F,4H), wh:(B,H,4H), b:(B,4H) (bf16 ok),
       w_lin:(1,H), b_lin:(1,1) f32.  Returns (out:(S,B,H), pred:(B,)).
       (On v5e, pass out_dtype=jnp.bfloat16 to halve the sequence writeback.)"""
    seq_len, batch, in_f = x.shape
    H = wh.shape[1]
    fourH = 4 * H
    assert wx.shape == (batch, in_f, fourH)
    assert wh.shape == (batch, H, fourH)
    assert b.shape == (batch, fourH)

    vmem_cap, n_cores = _tpu_hw_info()

    if time_block is None:
        time_block = _pick_time_block(seq_len)
    assert seq_len % time_block == 0

    if batch_block is None:
        batch_block = batch
        # Split batch across TensorCores only on multi-TC chips (v7x) and only
        # when each tile keeps the multiple-of-8 sublane alignment.  On
        # single-TC chips the grid is a serial loop, so splitting only adds
        # weight DMA / grid overhead.
        if n_cores > 1 and batch % (8 * n_cores) == 0:
            batch_block = batch // n_cores
    assert batch % batch_block == 0

    # Budget-driven shrink so we use the biggest tile that actually fits.
    budget = int(0.70 * vmem_cap)
    while (_vmem_estimate(time_block, batch_block, in_f, H) > budget
           and batch_block % 16 == 0 and batch % (batch_block // 2) == 0):
        batch_block //= 2
    while (_vmem_estimate(time_block, batch_block, in_f, H) > budget
           and time_block > 1):
        time_block = _pick_time_block(seq_len, max(1, time_block // 2))

    n_bt = batch // batch_block
    n_sb = seq_len // time_block
    est = _vmem_estimate(time_block, batch_block, in_f, H)
    vmem_limit = int(min(int(0.9 * vmem_cap),
                         max(32 * 1024 * 1024, 2 * est)))

    grid_spec = pltpu.PrefetchScalarGridSpec(
        num_scalar_prefetch=0,
        grid=(n_bt, n_sb),
        in_specs=[
            pl.BlockSpec((time_block, batch_block, in_f),
                         lambda tb, sb: (sb, tb, 0)),
            # TODO(synk): single-buffer the weight blocks (pipeline_mode=
            # pl.Buffered(1)) once supported for pallas_call inputs; their
            # index_map is constant along the inner seq axis.
            pl.BlockSpec((batch_block, in_f, fourH), lambda tb, sb: (tb, 0, 0)),
            pl.BlockSpec((batch_block, H, fourH), lambda tb, sb: (tb, 0, 0)),
            pl.BlockSpec((batch_block, fourH), lambda tb, sb: (tb, 0)),
            pl.BlockSpec((1, H), lambda tb, sb: (0, 0)),
            pl.BlockSpec(memory_space=pltpu.MemorySpace.SMEM),   # b_lin scalar
        ],
        out_specs=(
            pl.BlockSpec((time_block, batch_block, H),
                         lambda tb, sb: (sb, tb, 0)),
            pl.BlockSpec((batch_block, 1), lambda tb, sb: (tb, 0)),
        ),
        scratch_shapes=[
            pltpu.VMEM((batch_block, H), jnp.float32),                 # h carry
            pltpu.VMEM((batch_block, H), jnp.float32),                 # c carry
            pltpu.VMEM((time_block, batch_block, fourH), jnp.float32), # gx
        ],
    )

    out, pred = pl.pallas_call(
        _lstm_bayes_kernel,
        out_shape=(
            jax.ShapeDtypeStruct((seq_len, batch, H), out_dtype),
            jax.ShapeDtypeStruct((batch, 1), jnp.float32),
        ),
        grid_spec=grid_spec,
        compiler_params=pltpu.CompilerParams(
            dimension_semantics=("parallel", "arbitrary"),
            vmem_limit_bytes=vmem_limit),
    )(x, wx, wh, b, w_lin, b_lin)

    return out, pred[:, 0]


# ------------------------- plain-JAX glue / reference -------------------------

def apply_dropout_batch(key, W, prob, batch):
    """mask = (rand < prob), matching the PyTorch helper's (kept-with-prob-p,
    no rescale) semantics."""
    mask = (jax.random.uniform(key, (batch,) + W.shape) < prob).astype(W.dtype)
    return mask * W


def build_masked_params(key, weight_ih, weight_hh, bias_ih, bias_hh,
                        dropout_prob, batch, store_dtype=jnp.bfloat16):
    """Returns wx:(B,in,4H), wh:(B,H,4H), b:(B,4H); fused-gate order [i,f,g,o]."""
    H = weight_hh.shape[1]
    gate_keys = jax.random.split(key, 16)
    wx_g, wh_g, b_g = [], [], []
    for g in range(4):                               # gate order i, f, g, o
        k_wx, k_wh, k_bi, k_bh = gate_keys[4 * g:4 * g + 4]
        W_ix_T = weight_ih[g * H:(g + 1) * H, :].T   # (in, H)
        W_hx_T = weight_hh[g * H:(g + 1) * H, :].T   # (H, H)
        b_i = bias_ih[g * H:(g + 1) * H]
        b_h = bias_hh[g * H:(g + 1) * H]
        wx_g.append(apply_dropout_batch(k_wx, W_ix_T, dropout_prob, batch))
        wh_g.append(apply_dropout_batch(k_wh, W_hx_T, dropout_prob, batch))
        b_g.append(apply_dropout_batch(k_bi, b_i, dropout_prob, batch)
                   + apply_dropout_batch(k_bh, b_h, dropout_prob, batch))
    wx = jnp.concatenate(wx_g, axis=-1).astype(store_dtype)   # (B, in, 4H)
    wh = jnp.concatenate(wh_g, axis=-1).astype(store_dtype)   # (B, H, 4H)
    b = jnp.concatenate(b_g, axis=-1).astype(store_dtype)     # (B, 4H)
    return wx, wh, b


def reference_forward(x, wx, wh, b, w_lin, b_lin):
    seq_len, batch, _ = x.shape
    H = wh.shape[1]
    hi = lax.Precision.HIGHEST
    wx = wx.astype(jnp.float32)
    wh = wh.astype(jnp.float32)
    b = b.astype(jnp.float32)
    h = jnp.zeros((batch, H), jnp.float32)
    c = jnp.zeros((batch, H), jnp.float32)
    outs = []
    for t in range(seq_len):
        gates = (jnp.einsum('bi,bik->bk', x[t], wx, precision=hi)
                 + jnp.einsum('bj,bjk->bk', h, wh, precision=hi) + b)
        i_g = jax.nn.sigmoid(gates[:, 0 * H:1 * H])
        f_g = jax.nn.sigmoid(gates[:, 1 * H:2 * H])
        g_g = jnp.tanh(gates[:, 2 * H:3 * H])
        o_g = jax.nn.sigmoid(gates[:, 3 * H:4 * H])
        c = f_g * c + i_g * g_g
        h = o_g * jnp.tanh(c)
        outs.append(h)
    pred = jnp.sum(h * w_lin, axis=-1) + b_lin[0, 0]
    return jnp.stack(outs), pred


if __name__ == "__main__":
    seq_len, batch, in_f, H = 8, 2, 4, 32
    dropout_prob = 0.5

    key = jax.random.PRNGKey(0)
    keys = jax.random.split(key, 8)
    k = 1.0 / jnp.sqrt(jnp.float32(H))

    # nn.LSTM / nn.Linear - style uniform(-1/sqrt(H), 1/sqrt(H)) init (deterministic).
    weight_ih = jax.random.uniform(keys[0], (4 * H, in_f), minval=-k, maxval=k)
    weight_hh = jax.random.uniform(keys[1], (4 * H, H), minval=-k, maxval=k)
    bias_ih = jax.random.uniform(keys[2], (4 * H,), minval=-k, maxval=k)
    bias_hh = jax.random.uniform(keys[3], (4 * H,), minval=-k, maxval=k)
    w_lin = jax.random.uniform(keys[4], (1, H), minval=-k, maxval=k)   # Linear.weight
    b_lin = jax.random.uniform(keys[5], (1, 1), minval=-k, maxval=k)   # Linear.bias

    x = jax.random.normal(keys[6], (seq_len, batch, in_f), dtype=jnp.float32)

    wx, wh, b = build_masked_params(keys[7], weight_ih, weight_hh,
                                    bias_ih, bias_hh, dropout_prob, batch)

    out_seq, pred = jax.jit(lstm_bayes_forward)(x, wx, wh, b, w_lin, b_lin)
    pred = jax.block_until_ready(pred)

    out_exp, pred_exp = reference_forward(x, wx, wh, b, w_lin, b_lin)
    assert pred.shape == (batch,)
    assert jnp.allclose(out_seq, out_exp, atol=1e-4, rtol=1e-4), \
        float(jnp.max(jnp.abs(out_seq - out_exp)))
    assert jnp.allclose(pred, pred_exp, atol=1e-4, rtol=1e-4), \
        float(jnp.max(jnp.abs(pred - pred_exp)))

    print("KERNEL_OK")
</pallas_src>

<mosaic_0001>
module attributes {stable_mosaic.version = 11 : i64} {
  func.func @_lstm_bayes_kernel(%arg0: i32, %arg1: i32, %arg2: memref<8x2x4xf32, #tpu.memory_space<vmem>>, %arg3: memref<2x4x128xbf16, #tpu.memory_space<vmem>>, %arg4: memref<2x32x128xbf16, #tpu.memory_space<vmem>>, %arg5: memref<2x128xbf16, #tpu.memory_space<vmem>>, %arg6: memref<1x32xf32, #tpu.memory_space<vmem>>, %arg7: memref<1x1xf32, #tpu.memory_space<smem>>, %arg8: memref<8x2x32xf32, #tpu.memory_space<vmem>>, %arg9: memref<2x1xf32, #tpu.memory_space<vmem>>, %arg10: memref<2x32xf32, #tpu.memory_space<vmem>>, %arg11: memref<2x32xf32, #tpu.memory_space<vmem>>, %arg12: memref<8x2x128xf32, #tpu.memory_space<vmem>>) attributes {dimension_semantics = [#tpu.dimension_semantics<parallel>, #tpu.dimension_semantics<arbitrary>], iteration_bounds = array<i64: 1, 1>, scalar_prefetch = 0 : i64, scratch_operands = 3 : i64, tpu.core_type = #tpu.core_type<tc>, window_params = [{transform_indices = @transform_0, window_bounds = array<i64: 8, 2, 4>}, {transform_indices = @transform_1, window_bounds = array<i64: 2, 4, 128>}, {transform_indices = @transform_2, window_bounds = array<i64: 2, 32, 128>}, {transform_indices = @transform_3, window_bounds = array<i64: 2, 128>}, {pipeline_mode = #tpu.pipeline_mode<synchronous>, transform_indices = @transform_4, window_bounds = array<i64: 1, 32>}, {transform_indices = @transform_5, window_bounds = array<i64: 1, 1>}, {transform_indices = @transform_6, window_bounds = array<i64: 8, 2, 32>}, {transform_indices = @transform_7, window_bounds = array<i64: 2, 1>}]} {
    %c0_i32 = arith.constant 0 : i32
    %0 = arith.cmpi eq, %arg1, %c0_i32 : i32
    %1 = arith.extui %0 : i1 to i32
    %c0_i32_0 = arith.constant 0 : i32
    %2 = arith.cmpi ne, %1, %c0_i32_0 : i32
    scf.if %2 {
      %cst_88 = arith.constant 0.000000e+00 : f32
      %341 = vector.broadcast %cst_88 : f32 to vector<2x32xf32>
      %c0_89 = arith.constant 0 : index
      %c0_90 = arith.constant 0 : index
      %342 = vector.load %arg10[%c0_89, %c0_90] : memref<2x32xf32, #tpu.memory_space<vmem>>, vector<2x32xf32>
      tpu.vector_store %arg10[%c0_89, %c0_90], %341 {strides = array<i32>} : memref<2x32xf32, #tpu.memory_space<vmem>>, vector<2x32xf32>,
      %cst_91 = arith.constant 0.000000e+00 : f32
      %343 = vector.broadcast %cst_91 : f32 to vector<2x32xf32>
      %c0_92 = arith.constant 0 : index
      %c0_93 = arith.constant 0 : index
      %344 = vector.load %arg11[%c0_92, %c0_93] : memref<2x32xf32, #tpu.memory_space<vmem>>, vector<2x32xf32>
      tpu.vector_store %arg11[%c0_92, %c0_93], %343 {strides = array<i32>} : memref<2x32xf32, #tpu.memory_space<vmem>>, vector<2x32xf32>,
      %cst_94 = arith.constant 0.000000e+00 : f32
      %345 = vector.broadcast %cst_94 : f32 to vector<2x1xf32>
      %c0_95 = arith.constant 0 : index
      %c0_96 = arith.constant 0 : index
      %346 = vector.load %arg9[%c0_95, %c0_96] : memref<2x1xf32, #tpu.memory_space<vmem>>, vector<2x1xf32>
      tpu.vector_store %arg9[%c0_95, %c0_96], %345 {strides = array<i32>} : memref<2x1xf32, #tpu.memory_space<vmem>>, vector<2x1xf32>,
    } else {
    }
    %c0 = arith.constant 0 : index
    %c0_1 = arith.constant 0 : index
    %c0_2 = arith.constant 0 : index
    %3 = vector.load %arg4[%c0, %c0_1, %c0_2] : memref<2x32x128xbf16, #tpu.memory_space<vmem>>, vector<2x32x128xbf16>
    %4 = arith.extf %3 : vector<2x32x128xbf16> to vector<2x32x128xf32>
    %c0_3 = arith.constant 0 : index
    %c0_4 = arith.constant 0 : index
    %c0_5 = arith.constant 0 : index
    %5 = vector.load %arg3[%c0_3, %c0_4, %c0_5] : memref<2x4x128xbf16, #tpu.memory_space<vmem>>, vector<2x4x128xbf16>
    %6 = arith.extf %5 : vector<2x4x128xbf16> to vector<2x4x128xf32>
    %c0_6 = arith.constant 0 : index
    %c0_7 = arith.constant 0 : index
    %7 = vector.load %arg5[%c0_6, %c0_7] : memref<2x128xbf16, #tpu.memory_space<vmem>>, vector<2x128xbf16>
    %8 = arith.extf %7 : vector<2x128xbf16> to vector<2x128xf32>
    %c0_8 = arith.constant 0 : index
    %c0_9 = arith.constant 0 : index
    %c0_10 = arith.constant 0 : index
    %9 = vector.load %arg2[%c0_8, %c0_9, %c0_10] : memref<8x2x4xf32, #tpu.memory_space<vmem>>, vector<8x2x4xf32>
    %10 = vector.shape_cast %8 : vector<2x128xf32> to vector<1x2x128xf32>
    %11 = vector.shape_cast %10 : vector<1x2x128xf32> to vector<1x2x128xf32>
    %12 = vector.broadcast %11 : vector<1x2x128xf32> to vector<8x2x128xf32>
    %13 = vector.extract_strided_slice %9 {offsets = [0, 0, 0], sizes = [8, 2, 1], strides = [1, 1, 1]} : vector<8x2x4xf32> to vector<8x2x1xf32>
    %14 = vector.extract_strided_slice %6 {offsets = [0, 0, 0], sizes = [2, 1, 128], strides = [1, 1, 1]} : vector<2x4x128xf32> to vector<2x1x128xf32>
    %15 = vector.shape_cast %14 : vector<2x1x128xf32> to vector<2x128xf32>
    %16 = vector.shape_cast %15 : vector<2x128xf32> to vector<1x2x128xf32>
    %17 = vector.broadcast %13 : vector<8x2x1xf32> to vector<8x2x128xf32>
    %18 = vector.broadcast %16 : vector<1x2x128xf32> to vector<8x2x128xf32>
    %19 = arith.mulf %17, %18 : vector<8x2x128xf32>
    %20 = arith.addf %12, %19 : vector<8x2x128xf32>
    %21 = vector.extract_strided_slice %9 {offsets = [0, 0, 1], sizes = [8, 2, 1], strides = [1, 1, 1]} : vector<8x2x4xf32> to vector<8x2x1xf32>
    %22 = vector.extract_strided_slice %6 {offsets = [0, 1, 0], sizes = [2, 1, 128], strides = [1, 1, 1]} : vector<2x4x128xf32> to vector<2x1x128xf32>
    %23 = vector.shape_cast %22 : vector<2x1x128xf32> to vector<2x128xf32>
    %24 = vector.shape_cast %23 : vector<2x128xf32> to vector<1x2x128xf32>
    %25 = vector.broadcast %21 : vector<8x2x1xf32> to vector<8x2x128xf32>
    %26 = vector.broadcast %24 : vector<1x2x128xf32> to vector<8x2x128xf32>
    %27 = arith.mulf %25, %26 : vector<8x2x128xf32>
    %28 = arith.addf %20, %27 : vector<8x2x128xf32>
    %29 = vector.extract_strided_slice %9 {offsets = [0, 0, 2], sizes = [8, 2, 1], strides = [1, 1, 1]} : vector<8x2x4xf32> to vector<8x2x1xf32>
    %30 = vector.extract_strided_slice %6 {offsets = [0, 2, 0], sizes = [2, 1, 128], strides = [1, 1, 1]} : vector<2x4x128xf32> to vector<2x1x128xf32>
    %31 = vector.shape_cast %30 : vector<2x1x128xf32> to vector<2x128xf32>
    %32 = vector.shape_cast %31 : vector<2x128xf32> to vector<1x2x128xf32>
    %33 = vector.broadcast %29 : vector<8x2x1xf32> to vector<8x2x128xf32>
    %34 = vector.broadcast %32 : vector<1x2x128xf32> to vector<8x2x128xf32>
    %35 = arith.mulf %33, %34 : vector<8x2x128xf32>
    %36 = arith.addf %28, %35 : vector<8x2x128xf32>
    %37 = vector.extract_strided_slice %9 {offsets = [0, 0, 3], sizes = [8, 2, 1], strides = [1, 1, 1]} : vector<8x2x4xf32> to vector<8x2x1xf32>
    %38 = vector.extract_strided_slice %6 {offsets = [0, 3, 0], sizes = [2, 1, 128], strides = [1, 1, 1]} : vector<2x4x128xf32> to vector<2x1x128xf32>
    %39 = vector.shape_cast %38 : vector<2x1x128xf32> to vector<2x128xf32>
    %40 = vector.shape_cast %39 : vector<2x128xf32> to vector<1x2x128xf32>
    %41 = vector.broadcast %37 : vector<8x2x1xf32> to vector<8x2x128xf32>
    %42 = vector.broadcast %40 : vector<1x2x128xf32> to vector<8x2x128xf32>
    %43 = arith.mulf %41, %42 : vector<8x2x128xf32>
    %44 = arith.addf %36, %43 : vector<8x2x128xf32>
    %c0_11 = arith.constant 0 : index
    %c0_12 = arith.constant 0 : index
    %c0_13 = arith.constant 0 : index
    %45 = vector.load %arg12[%c0_11, %c0_12, %c0_13] : memref<8x2x128xf32, #tpu.memory_space<vmem>>, vector<8x2x128xf32>
    tpu.vector_store %arg12[%c0_11, %c0_12, %c0_13], %44 {strides = array<i32>} : memref<8x2x128xf32, #tpu.memory_space<vmem>>, vector<8x2x128xf32>,
    %c0_14 = arith.constant 0 : index
    %c0_15 = arith.constant 0 : index
    %46 = vector.load %arg10[%c0_14, %c0_15] : memref<2x32xf32, #tpu.memory_space<vmem>>, vector<2x32xf32>
    %c0_16 = arith.constant 0 : index
    %c0_17 = arith.constant 0 : index
    %47 = vector.load %arg11[%c0_16, %c0_17] : memref<2x32xf32, #tpu.memory_space<vmem>>, vector<2x32xf32>
    %c0_i32_18 = arith.constant 0 : i32
    %48 = vector.shape_cast %46 : vector<2x32xf32> to vector<2x1x32xf32>
    %cst = arith.constant dense<0.000000e+00> : vector<2x1x128xf32>
    %49 = tpu.matmul %48, %4, %cst {dimension_numbers = #tpu.dot_dimension_numbers<[2], [1], [1], [2], [0, 0, 0, 1, 1, 2], [0], [0]>, precision = #tpu.contract_precision<fp32>} : vector<2x1x32xf32>, vector<2x32x128xf32>, vector<2x1x128xf32> -> vector<2x1x128xf32>
    %50 = vector.shape_cast %49 : vector<2x1x128xf32> to vector<2x128xf32>
    %51 = arith.index_cast %c0_i32_18 : i32 to index
    %c0_19 = arith.constant 0 : index
    %c0_20 = arith.constant 0 : index
    %52 = vector.load %arg12[%51, %c0_19, %c0_20] : memref<8x2x128xf32, #tpu.memory_space<vmem>>, vector<1x2x128xf32>
    %53 = vector.shape_cast %52 : vector<1x2x128xf32> to vector<2x128xf32>
    %54 = arith.addf %53, %50 : vector<2x128xf32>
    %55 = vector.extract_strided_slice %54 {offsets = [0, 0], sizes = [2, 32], strides = [1, 1]} : vector<2x128xf32> to vector<2x32xf32>
    %56 = arith.negf %55 : vector<2x32xf32>
    %57 = math.exp %56 : vector<2x32xf32>
    %cst_21 = arith.constant 1.000000e+00 : f32
    %58 = vector.broadcast %cst_21 : f32 to vector<2x32xf32>
    %59 = arith.addf %58, %57 : vector<2x32xf32>
    %60 = arith.divf %58, %59 : vector<2x32xf32>
    %61 = vector.extract_strided_slice %54 {offsets = [0, 32], sizes = [2, 32], strides = [1, 1]} : vector<2x128xf32> to vector<2x32xf32>
    %62 = arith.negf %61 : vector<2x32xf32>
    %63 = math.exp %62 : vector<2x32xf32>
    %cst_22 = arith.constant 1.000000e+00 : f32
    %64 = vector.broadcast %cst_22 : f32 to vector<2x32xf32>
    %65 = arith.addf %64, %63 : vector<2x32xf32>
    %66 = arith.divf %64, %65 : vector<2x32xf32>
    %67 = vector.extract_strided_slice %54 {offsets = [0, 64], sizes = [2, 32], strides = [1, 1]} : vector<2x128xf32> to vector<2x32xf32>
    %68 = math.tanh %67 : vector<2x32xf32>
    %69 = vector.extract_strided_slice %54 {offsets = [0, 96], sizes = [2, 32], strides = [1, 1]} : vector<2x128xf32> to vector<2x32xf32>
    %70 = arith.negf %69 : vector<2x32xf32>
    %71 = math.exp %70 : vector<2x32xf32>
    %cst_23 = arith.constant 1.000000e+00 : f32
    %72 = vector.broadcast %cst_23 : f32 to vector<2x32xf32>
    %73 = arith.addf %72, %71 : vector<2x32xf32>
    %74 = arith.divf %72, %73 : vector<2x32xf32>
    %75 = arith.mulf %66, %47 : vector<2x32xf32>
    %76 = arith.mulf %60, %68 : vector<2x32xf32>
    %77 = arith.addf %75, %76 : vector<2x32xf32>
    %78 = math.tanh %77 : vector<2x32xf32>
    %79 = arith.mulf %74, %78 : vector<2x32xf32>
    %80 = arith.index_cast %c0_i32_18 : i32 to index
    %c0_24 = arith.constant 0 : index
    %c0_25 = arith.constant 0 : index
    %81 = vector.load %arg8[%80, %c0_24, %c0_25] : memref<8x2x32xf32, #tpu.memory_space<vmem>>, vector<1x2x32xf32>
    %82 = vector.shape_cast %81 : vector<1x2x32xf32> to vector<2x32xf32>
    %83 = vector.shape_cast %79 : vector<2x32xf32> to vector<1x2x32xf32>
    tpu.vector_store %arg8[%80, %c0_24, %c0_25], %83 {strides = array<i32>} : memref<8x2x32xf32, #tpu.memory_space<vmem>>, vector<1x2x32xf32>,
    %c1_i32 = arith.constant 1 : i32
    %84 = vector.shape_cast %79 : vector<2x32xf32> to vector<2x1x32xf32>
    %cst_26 = arith.constant dense<0.000000e+00> : vector<2x1x128xf32>
    %85 = tpu.matmul %84, %4, %cst_26 {dimension_numbers = #tpu.dot_dimension_numbers<[2], [1], [1], [2], [0, 0, 0, 1, 1, 2], [0], [0]>, precision = #tpu.contract_precision<fp32>} : vector<2x1x32xf32>, vector<2x32x128xf32>, vector<2x1x128xf32> -> vector<2x1x128xf32>
    %86 = vector.shape_cast %85 : vector<2x1x128xf32> to vector<2x128xf32>
    %87 = arith.index_cast %c1_i32 : i32 to index
    %c0_27 = arith.constant 0 : index
    %c0_28 = arith.constant 0 : index
    %88 = vector.load %arg12[%87, %c0_27, %c0_28] : memref<8x2x128xf32, #tpu.memory_space<vmem>>, vector<1x2x128xf32>
    %89 = vector.shape_cast %88 : vector<1x2x128xf32> to vector<2x128xf32>
    %90 = arith.addf %89, %86 : vector<2x128xf32>
    %91 = vector.extract_strided_slice %90 {offsets = [0, 0], sizes = [2, 32], strides = [1, 1]} : vector<2x128xf32> to vector<2x32xf32>
    %92 = arith.negf %91 : vector<2x32xf32>
    %93 = math.exp %92 : vector<2x32xf32>
    %cst_29 = arith.constant 1.000000e+00 : f32
    %94 = vector.broadcast %cst_29 : f32 to vector<2x32xf32>
    %95 = arith.addf %94, %93 : vector<2x32xf32>
    %96 = arith.divf %94, %95 : vector<2x32xf32>
    %97 = vector.extract_strided_slice %90 {offsets = [0, 32], sizes = [2, 32], strides = [1, 1]} : vector<2x128xf32> to vector<2x32xf32>
    %98 = arith.negf %97 : vector<2x32xf32>
    %99 = math.exp %98 : vector<2x32xf32>
    %cst_30 = arith.constant 1.000000e+00 : f32
    %100 = vector.broadcast %cst_30 : f32 to vector<2x32xf32>
    %101 = arith.addf %100, %99 : vector<2x32xf32>
    %102 = arith.divf %100, %101 : vector<2x32xf32>
    %103 = vector.extract_strided_slice %90 {offsets = [0, 64], sizes = [2, 32], strides = [1, 1]} : vector<2x128xf32> to vector<2x32xf32>
    %104 = math.tanh %103 : vector<2x32xf32>
    %105 = vector.extract_strided_slice %90 {offsets = [0, 96], sizes = [2, 32], strides = [1, 1]} : vector<2x128xf32> to vector<2x32xf32>
    %106 = arith.negf %105 : vector<2x32xf32>
    %107 = math.exp %106 : vector<2x32xf32>
    %cst_31 = arith.constant 1.000000e+00 : f32
    %108 = vector.broadcast %cst_31 : f32 to vector<2x32xf32>
    %109 = arith.addf %108, %107 : vector<2x32xf32>
    %110 = arith.divf %108, %109 : vector<2x32xf32>
    %111 = arith.mulf %102, %77 : vector<2x32xf32>
    %112 = arith.mulf %96, %104 : vector<2x32xf32>
    %113 = arith.addf %111, %112 : vector<2x32xf32>
    %114 = math.tanh %113 : vector<2x32xf32>
    %115 = arith.mulf %110, %114 : vector<2x32xf32>
    %116 = arith.index_cast %c1_i32 : i32 to index
    %c0_32 = arith.constant 0 : index
    %c0_33 = arith.constant 0 : index
    %117 = vector.load %arg8[%116, %c0_32, %c0_33] : memref<8x2x32xf32, #tpu.memory_space<vmem>>, vector<1x2x32xf32>
    %118 = vector.shape_cast %117 : vector<1x2x32xf32> to vector<2x32xf32>
    %119 = vector.shape_cast %115 : vector<2x32xf32> to vector<1x2x32xf32>
    tpu.vector_store %arg8[%116, %c0_32, %c0_33], %119 {strides = array<i32>} : memref<8x2x32xf32, #tpu.memory_space<vmem>>, vector<1x2x32xf32>,
    %c2_i32 = arith.constant 2 : i32
    %120 = vector.shape_cast %115 : vector<2x32xf32> to vector<2x1x32xf32>
    %cst_34 = arith.constant dense<0.000000e+00> : vector<2x1x128xf32>
    %121 = tpu.matmul %120, %4, %cst_34 {dimension_numbers = #tpu.dot_dimension_numbers<[2], [1], [1], [2], [0, 0, 0, 1, 1, 2], [0], [0]>, precision = #tpu.contract_precision<fp32>} : vector<2x1x32xf32>, vector<2x32x128xf32>, vector<2x1x128xf32> -> vector<2x1x128xf32>
    %122 = vector.shape_cast %121 : vector<2x1x128xf32> to vector<2x128xf32>
    %123 = arith.index_cast %c2_i32 : i32 to index
    %c0_35 = arith.constant 0 : index
    %c0_36 = arith.constant 0 : index
    %124 = vector.load %arg12[%123, %c0_35, %c0_36] : memref<8x2x128xf32, #tpu.memory_space<vmem>>, vector<1x2x128xf32>
    %125 = vector.shape_cast %124 : vector<1x2x128xf32> to vector<2x128xf32>
    %126 = arith.addf %125, %122 : vector<2x128xf32>
    %127 = vector.extract_strided_slice %126 {offsets = [0, 0], sizes = [2, 32], strides = [1, 1]} : vector<2x128xf32> to vector<2x32xf32>
    %128 = arith.negf %127 : vector<2x32xf32>
    %129 = math.exp %128 : vector<2x32xf32>
    %cst_37 = arith.constant 1.000000e+00 : f32
    %130 = vector.broadcast %cst_37 : f32 to vector<2x32xf32>
    %131 = arith.addf %130, %129 : vector<2x32xf32>
    %132 = arith.divf %130, %131 : vector<2x32xf32>
    %133 = vector.extract_strided_slice %126 {offsets = [0, 32], sizes = [2, 32], strides = [1, 1]} : vector<2x128xf32> to vector<2x32xf32>
    %134 = arith.negf %133 : vector<2x32xf32>
    %135 = math.exp %134 : vector<2x32xf32>
    %cst_38 = arith.constant 1.000000e+00 : f32
    %136 = vector.broadcast %cst_38 : f32 to vector<2x32xf32>
    %137 = arith.addf %136, %135 : vector<2x32xf32>
    %138 = arith.divf %136, %137 : vector<2x32xf32>
    %139 = vector.extract_strided_slice %126 {offsets = [0, 64], sizes = [2, 32], strides = [1, 1]} : vector<2x128xf32> to vector<2x32xf32>
    %140 = math.tanh %139 : vector<2x32xf32>
    %141 = vector.extract_strided_slice %126 {offsets = [0, 96], sizes = [2, 32], strides = [1, 1]} : vector<2x128xf32> to vector<2x32xf32>
    %142 = arith.negf %141 : vector<2x32xf32>
    %143 = math.exp %142 : vector<2x32xf32>
    %cst_39 = arith.constant 1.000000e+00 : f32
    %144 = vector.broadcast %cst_39 : f32 to vector<2x32xf32>
    %145 = arith.addf %144, %143 : vector<2x32xf32>
    %146 = arith.divf %144, %145 : vector<2x32xf32>
    %147 = arith.mulf %138, %113 : vector<2x32xf32>
    %148 = arith.mulf %132, %140 : vector<2x32xf32>
    %149 = arith.addf %147, %148 : vector<2x32xf32>
    %150 = math.tanh %149 : vector<2x32xf32>
    %151 = arith.mulf %146, %150 : vector<2x32xf32>
    %152 = arith.index_cast %c2_i32 : i32 to index
    %c0_40 = arith.constant 0 : index
    %c0_41 = arith.constant 0 : index
    %153 = vector.load %arg8[%152, %c0_40, %c0_41] : memref<8x2x32xf32, #tpu.memory_space<vmem>>, vector<1x2x32xf32>
    %154 = vector.shape_cast %153 : vector<1x2x32xf32> to vector<2x32xf32>
    %155 = vector.shape_cast %151 : vector<2x32xf32> to vector<1x2x32xf32>
    tpu.vector_store %arg8[%152, %c0_40, %c0_41], %155 {strides = array<i32>} : memref<8x2x32xf32, #tpu.memory_space<vmem>>, vector<1x2x32xf32>,
    %c3_i32 = arith.constant 3 : i32
    %156 = vector.shape_cast %151 : vector<2x32xf32> to vector<2x1x32xf32>
    %cst_42 = arith.constant dense<0.000000e+00> : vector<2x1x128xf32>
    %157 = tpu.matmul %156, %4, %cst_42 {dimension_numbers = #tpu.dot_dimension_numbers<[2], [1], [1], [2], [0, 0, 0, 1, 1, 2], [0], [0]>, precision = #tpu.contract_precision<fp32>} : vector<2x1x32xf32>, vector<2x32x128xf32>, vector<2x1x128xf32> -> vector<2x1x128xf32>
    %158 = vector.shape_cast %157 : vector<2x1x128xf32> to vector<2x128xf32>
    %159 = arith.index_cast %c3_i32 : i32 to index
    %c0_43 = arith.constant 0 : index
    %c0_44 = arith.constant 0 : index
    %160 = vector.load %arg12[%159, %c0_43, %c0_44] : memref<8x2x128xf32, #tpu.memory_space<vmem>>, vector<1x2x128xf32>
    %161 = vector.shape_cast %160 : vector<1x2x128xf32> to vector<2x128xf32>
    %162 = arith.addf %161, %158 : vector<2x128xf32>
    %163 = vector.extract_strided_slice %162 {offsets = [0, 0], sizes = [2, 32], strides = [1, 1]} : vector<2x128xf32> to vector<2x32xf32>
    %164 = arith.negf %163 : vector<2x32xf32>
    %165 = math.exp %164 : vector<2x32xf32>
    %cst_45 = arith.constant 1.000000e+00 : f32
    %166 = vector.broadcast %cst_45 : f32 to vector<2x32xf32>
    %167 = arith.addf %166, %165 : vector<2x32xf32>
    %168 = arith.divf %166, %167 : vector<2x32xf32>
    %169 = vector.extract_strided_slice %162 {offsets = [0, 32], sizes = [2, 32], strides = [1, 1]} : vector<2x128xf32> to vector<2x32xf32>
    %170 = arith.negf %169 : vector<2x32xf32>
    %171 = math.exp %170 : vector<2x32xf32>
    %cst_46 = arith.constant 1.000000e+00 : f32
    %172 = vector.broadcast %cst_46 : f32 to vector<2x32xf32>
    %173 = arith.addf %172, %171 : vector<2x32xf32>
    %174 = arith.divf %172, %173 : vector<2x32xf32>
    %175 = vector.extract_strided_slice %162 {offsets = [0, 64], sizes = [2, 32], strides = [1, 1]} : vector<2x128xf32> to vector<2x32xf32>
    %176 = math.tanh %175 : vector<2x32xf32>
    %177 = vector.extract_strided_slice %162 {offsets = [0, 96], sizes = [2, 32], strides = [1, 1]} : vector<2x128xf32> to vector<2x32xf32>
    %178 = arith.negf %177 : vector<2x32xf32>
    %179 = math.exp %178 : vector<2x32xf32>
    %cst_47 = arith.constant 1.000000e+00 : f32
    %180 = vector.broadcast %cst_47 : f32 to vector<2x32xf32>
    %181 = arith.addf %180, %179 : vector<2x32xf32>
    %182 = arith.divf %180, %181 : vector<2x32xf32>
    %183 = arith.mulf %174, %149 : vector<2x32xf32>
    %184 = arith.mulf %168, %176 : vector<2x32xf32>
    %185 = arith.addf %183, %184 : vector<2x32xf32>
    %186 = math.tanh %185 : vector<2x32xf32>
    %187 = arith.mulf %182, %186 : vector<2x32xf32>
    %188 = arith.index_cast %c3_i32 : i32 to index
    %c0_48 = arith.constant 0 : index
    %c0_49 = arith.constant 0 : index
    %189 = vector.load %arg8[%188, %c0_48, %c0_49] : memref<8x2x32xf32, #tpu.memory_space<vmem>>, vector<1x2x32xf32>
    %190 = vector.shape_cast %189 : vector<1x2x32xf32> to vector<2x32xf32>
    %191 = vector.shape_cast %187 : vector<2x32xf32> to vector<1x2x32xf32>
    tpu.vector_store %arg8[%188, %c0_48, %c0_49], %191 {strides = array<i32>} : memref<8x2x32xf32, #tpu.memory_space<vmem>>, vector<1x2x32xf32>,
    %c4_i32 = arith.constant 4 : i32
    %192 = vector.shape_cast %187 : vector<2x32xf32> to vector<2x1x32xf32>
    %cst_50 = arith.constant dense<0.000000e+00> : vector<2x1x128xf32>
    %193 = tpu.matmul %192, %4, %cst_50 {dimension_numbers = #tpu.dot_dimension_numbers<[2], [1], [1], [2], [0, 0, 0, 1, 1, 2], [0], [0]>, precision = #tpu.contract_precision<fp32>} : vector<2x1x32xf32>, vector<2x32x128xf32>, vector<2x1x128xf32> -> vector<2x1x128xf32>
    %194 = vector.shape_cast %193 : vector<2x1x128xf32> to vector<2x128xf32>
    %195 = arith.index_cast %c4_i32 : i32 to index
    %c0_51 = arith.constant 0 : index
    %c0_52 = arith.constant 0 : index
    %196 = vector.load %arg12[%195, %c0_51, %c0_52] : memref<8x2x128xf32, #tpu.memory_space<vmem>>, vector<1x2x128xf32>
    %197 = vector.shape_cast %196 : vector<1x2x128xf32> to vector<2x128xf32>
    %198 = arith.addf %197, %194 : vector<2x128xf32>
    %199 = vector.extract_strided_slice %198 {offsets = [0, 0], sizes = [2, 32], strides = [1, 1]} : vector<2x128xf32> to vector<2x32xf32>
    %200 = arith.negf %199 : vector<2x32xf32>
    %201 = math.exp %200 : vector<2x32xf32>
    %cst_53 = arith.constant 1.000000e+00 : f32
    %202 = vector.broadcast %cst_53 : f32 to vector<2x32xf32>
    %203 = arith.addf %202, %201 : vector<2x32xf32>
    %204 = arith.divf %202, %203 : vector<2x32xf32>
    %205 = vector.extract_strided_slice %198 {offsets = [0, 32], sizes = [2, 32], strides = [1, 1]} : vector<2x128xf32> to vector<2x32xf32>
    %206 = arith.negf %205 : vector<2x32xf32>
    %207 = math.exp %206 : vector<2x32xf32>
    %cst_54 = arith.constant 1.000000e+00 : f32
    %208 = vector.broadcast %cst_54 : f32 to vector<2x32xf32>
    %209 = arith.addf %208, %207 : vector<2x32xf32>
    %210 = arith.divf %208, %209 : vector<2x32xf32>
    %211 = vector.extract_strided_slice %198 {offsets = [0, 64], sizes = [2, 32], strides = [1, 1]} : vector<2x128xf32> to vector<2x32xf32>
    %212 = math.tanh %211 : vector<2x32xf32>
    %213 = vector.extract_strided_slice %198 {offsets = [0, 96], sizes = [2, 32], strides = [1, 1]} : vector<2x128xf32> to vector<2x32xf32>
    %214 = arith.negf %213 : vector<2x32xf32>
    %215 = math.exp %214 : vector<2x32xf32>
    %cst_55 = arith.constant 1.000000e+00 : f32
    %216 = vector.broadcast %cst_55 : f32 to vector<2x32xf32>
    %217 = arith.addf %216, %215 : vector<2x32xf32>
    %218 = arith.divf %216, %217 : vector<2x32xf32>
    %219 = arith.mulf %210, %185 : vector<2x32xf32>
    %220 = arith.mulf %204, %212 : vector<2x32xf32>
    %221 = arith.addf %219, %220 : vector<2x32xf32>
    %222 = math.tanh %221 : vector<2x32xf32>
    %223 = arith.mulf %218, %222 : vector<2x32xf32>
    %224 = arith.index_cast %c4_i32 : i32 to index
    %c0_56 = arith.constant 0 : index
    %c0_57 = arith.constant 0 : index
    %225 = vector.load %arg8[%224, %c0_56, %c0_57] : memref<8x2x32xf32, #tpu.memory_space<vmem>>, vector<1x2x32xf32>
    %226 = vector.shape_cast %225 : vector<1x2x32xf32> to vector<2x32xf32>
    %227 = vector.shape_cast %223 : vector<2x32xf32> to vector<1x2x32xf32>
    tpu.vector_store %arg8[%224, %c0_56, %c0_57], %227 {strides = array<i32>} : memref<8x2x32xf32, #tpu.memory_space<vmem>>, vector<1x2x32xf32>,
    %c5_i32 = arith.constant 5 : i32
    %228 = vector.shape_cast %223 : vector<2x32xf32> to vector<2x1x32xf32>
    %cst_58 = arith.constant dense<0.000000e+00> : vector<2x1x128xf32>
    %229 = tpu.matmul %228, %4, %cst_58 {dimension_numbers = #tpu.dot_dimension_numbers<[2], [1], [1], [2], [0, 0, 0, 1, 1, 2], [0], [0]>, precision = #tpu.contract_precision<fp32>} : vector<2x1x32xf32>, vector<2x32x128xf32>, vector<2x1x128xf32> -> vector<2x1x128xf32>
    %230 = vector.shape_cast %229 : vector<2x1x128xf32> to vector<2x128xf32>
    %231 = arith.index_cast %c5_i32 : i32 to index
    %c0_59 = arith.constant 0 : index
    %c0_60 = arith.constant 0 : index
    %232 = vector.load %arg12[%231, %c0_59, %c0_60] : memref<8x2x128xf32, #tpu.memory_space<vmem>>, vector<1x2x128xf32>
    %233 = vector.shape_cast %232 : vector<1x2x128xf32> to vector<2x128xf32>
    %234 = arith.addf %233, %230 : vector<2x128xf32>
    %235 = vector.extract_strided_slice %234 {offsets = [0, 0], sizes = [2, 32], strides = [1, 1]} : vector<2x128xf32> to vector<2x32xf32>
    %236 = arith.negf %235 : vector<2x32xf32>
    %237 = math.exp %236 : vector<2x32xf32>
    %cst_61 = arith.constant 1.000000e+00 : f32
    %238 = vector.broadcast %cst_61 : f32 to vector<2x32xf32>
    %239 = arith.addf %238, %237 : vector<2x32xf32>
    %240 = arith.divf %238, %239 : vector<2x32xf32>
    %241 = vector.extract_strided_slice %234 {offsets = [0, 32], sizes = [2, 32], strides = [1, 1]} : vector<2x128xf32> to vector<2x32xf32>
    %242 = arith.negf %241 : vector<2x32xf32>
    %243 = math.exp %242 : vector<2x32xf32>
    %cst_62 = arith.constant 1.000000e+00 : f32
    %244 = vector.broadcast %cst_62 : f32 to vector<2x32xf32>
    %245 = arith.addf %244, %243 : vector<2x32xf32>
    %246 = arith.divf %244, %245 : vector<2x32xf32>
    %247 = vector.extract_strided_slice %234 {offsets = [0, 64], sizes = [2, 32], strides = [1, 1]} : vector<2x128xf32> to vector<2x32xf32>
    %248 = math.tanh %247 : vector<2x32xf32>
    %249 = vector.extract_strided_slice %234 {offsets = [0, 96], sizes = [2, 32], strides = [1, 1]} : vector<2x128xf32> to vector<2x32xf32>
    %250 = arith.negf %249 : vector<2x32xf32>
    %251 = math.exp %250 : vector<2x32xf32>
    %cst_63 = arith.constant 1.000000e+00 : f32
    %252 = vector.broadcast %cst_63 : f32 to vector<2x32xf32>
    %253 = arith.addf %252, %251 : vector<2x32xf32>
    %254 = arith.divf %252, %253 : vector<2x32xf32>
    %255 = arith.mulf %246, %221 : vector<2x32xf32>
    %256 = arith.mulf %240, %248 : vector<2x32xf32>
    %257 = arith.addf %255, %256 : vector<2x32xf32>
    %258 = math.tanh %257 : vector<2x32xf32>
    %259 = arith.mulf %254, %258 : vector<2x32xf32>
    %260 = arith.index_cast %c5_i32 : i32 to index
    %c0_64 = arith.constant 0 : index
    %c0_65 = arith.constant 0 : index
    %261 = vector.load %arg8[%260, %c0_64, %c0_65] : memref<8x2x32xf32, #tpu.memory_space<vmem>>, vector<1x2x32xf32>
    %262 = vector.shape_cast %261 : vector<1x2x32xf32> to vector<2x32xf32>
    %263 = vector.shape_cast %259 : vector<2x32xf32> to vector<1x2x32xf32>
    tpu.vector_store %arg8[%260, %c0_64, %c0_65], %263 {strides = array<i32>} : memref<8x2x32xf32, #tpu.memory_space<vmem>>, vector<1x2x32xf32>,
    %c6_i32 = arith.constant 6 : i32
    %264 = vector.shape_cast %259 : vector<2x32xf32> to vector<2x1x32xf32>
    %cst_66 = arith.constant dense<0.000000e+00> : vector<2x1x128xf32>
    %265 = tpu.matmul %264, %4, %cst_66 {dimension_numbers = #tpu.dot_dimension_numbers<[2], [1], [1], [2], [0, 0, 0, 1, 1, 2], [0], [0]>, precision = #tpu.contract_precision<fp32>} : vector<2x1x32xf32>, vector<2x32x128xf32>, vector<2x1x128xf32> -> vector<2x1x128xf32>
    %266 = vector.shape_cast %265 : vector<2x1x128xf32> to vector<2x128xf32>
    %267 = arith.index_cast %c6_i32 : i32 to index
    %c0_67 = arith.constant 0 : index
    %c0_68 = arith.constant 0 : index
    %268 = vector.load %arg12[%267, %c0_67, %c0_68] : memref<8x2x128xf32, #tpu.memory_space<vmem>>, vector<1x2x128xf32>
    %269 = vector.shape_cast %268 : vector<1x2x128xf32> to vector<2x128xf32>
    %270 = arith.addf %269, %266 : vector<2x128xf32>
    %271 = vector.extract_strided_slice %270 {offsets = [0, 0], sizes = [2, 32], strides = [1, 1]} : vector<2x128xf32> to vector<2x32xf32>
    %272 = arith.negf %271 : vector<2x32xf32>
    %273 = math.exp %272 : vector<2x32xf32>
    %cst_69 = arith.constant 1.000000e+00 : f32
    %274 = vector.broadcast %cst_69 : f32 to vector<2x32xf32>
    %275 = arith.addf %274, %273 : vector<2x32xf32>
    %276 = arith.divf %274, %275 : vector<2x32xf32>
    %277 = vector.extract_strided_slice %270 {offsets = [0, 32], sizes = [2, 32], strides = [1, 1]} : vector<2x128xf32> to vector<2x32xf32>
    %278 = arith.negf %277 : vector<2x32xf32>
    %279 = math.exp %278 : vector<2x32xf32>
    %cst_70 = arith.constant 1.000000e+00 : f32
    %280 = vector.broadcast %cst_70 : f32 to vector<2x32xf32>
    %281 = arith.addf %280, %279 : vector<2x32xf32>
    %282 = arith.divf %280, %281 : vector<2x32xf32>
    %283 = vector.extract_strided_slice %270 {offsets = [0, 64], sizes = [2, 32], strides = [1, 1]} : vector<2x128xf32> to vector<2x32xf32>
    %284 = math.tanh %283 : vector<2x32xf32>
    %285 = vector.extract_strided_slice %270 {offsets = [0, 96], sizes = [2, 32], strides = [1, 1]} : vector<2x128xf32> to vector<2x32xf32>
    %286 = arith.negf %285 : vector<2x32xf32>
    %287 = math.exp %286 : vector<2x32xf32>
    %cst_71 = arith.constant 1.000000e+00 : f32
    %288 = vector.broadcast %cst_71 : f32 to vector<2x32xf32>
    %289 = arith.addf %288, %287 : vector<2x32xf32>
    %290 = arith.divf %288, %289 : vector<2x32xf32>
    %291 = arith.mulf %282, %257 : vector<2x32xf32>
    %292 = arith.mulf %276, %284 : vector<2x32xf32>
    %293 = arith.addf %291, %292 : vector<2x32xf32>
    %294 = math.tanh %293 : vector<2x32xf32>
    %295 = arith.mulf %290, %294 : vector<2x32xf32>
    %296 = arith.index_cast %c6_i32 : i32 to index
    %c0_72 = arith.constant 0 : index
    %c0_73 = arith.constant 0 : index
    %297 = vector.load %arg8[%296, %c0_72, %c0_73] : memref<8x2x32xf32, #tpu.memory_space<vmem>>, vector<1x2x32xf32>
    %298 = vector.shape_cast %297 : vector<1x2x32xf32> to vector<2x32xf32>
    %299 = vector.shape_cast %295 : vector<2x32xf32> to vector<1x2x32xf32>
    tpu.vector_store %arg8[%296, %c0_72, %c0_73], %299 {strides = array<i32>} : memref<8x2x32xf32, #tpu.memory_space<vmem>>, vector<1x2x32xf32>,
    %c7_i32 = arith.constant 7 : i32
    %300 = vector.shape_cast %295 : vector<2x32xf32> to vector<2x1x32xf32>
    %cst_74 = arith.constant dense<0.000000e+00> : vector<2x1x128xf32>
    %301 = tpu.matmul %300, %4, %cst_74 {dimension_numbers = #tpu.dot_dimension_numbers<[2], [1], [1], [2], [0, 0, 0, 1, 1, 2], [0], [0]>, precision = #tpu.contract_precision<fp32>} : vector<2x1x32xf32>, vector<2x32x128xf32>, vector<2x1x128xf32> -> vector<2x1x128xf32>
    %302 = vector.shape_cast %301 : vector<2x1x128xf32> to vector<2x128xf32>
    %303 = arith.index_cast %c7_i32 : i32 to index
    %c0_75 = arith.constant 0 : index
    %c0_76 = arith.constant 0 : index
    %304 = vector.load %arg12[%303, %c0_75, %c0_76] : memref<8x2x128xf32, #tpu.memory_space<vmem>>, vector<1x2x128xf32>
    %305 = vector.shape_cast %304 : vector<1x2x128xf32> to vector<2x128xf32>
    %306 = arith.addf %305, %302 : vector<2x128xf32>
    %307 = vector.extract_strided_slice %306 {offsets = [0, 0], sizes = [2, 32], strides = [1, 1]} : vector<2x128xf32> to vector<2x32xf32>
    %308 = arith.negf %307 : vector<2x32xf32>
    %309 = math.exp %308 : vector<2x32xf32>
    %cst_77 = arith.constant 1.000000e+00 : f32
    %310 = vector.broadcast %cst_77 : f32 to vector<2x32xf32>
    %311 = arith.addf %310, %309 : vector<2x32xf32>
    %312 = arith.divf %310, %311 : vector<2x32xf32>
    %313 = vector.extract_strided_slice %306 {offsets = [0, 32], sizes = [2, 32], strides = [1, 1]} : vector<2x128xf32> to vector<2x32xf32>
    %314 = arith.negf %313 : vector<2x32xf32>
    %315 = math.exp %314 : vector<2x32xf32>
    %cst_78 = arith.constant 1.000000e+00 : f32
    %316 = vector.broadcast %cst_78 : f32 to vector<2x32xf32>
    %317 = arith.addf %316, %315 : vector<2x32xf32>
    %318 = arith.divf %316, %317 : vector<2x32xf32>
    %319 = vector.extract_strided_slice %306 {offsets = [0, 64], sizes = [2, 32], strides = [1, 1]} : vector<2x128xf32> to vector<2x32xf32>
    %320 = math.tanh %319 : vector<2x32xf32>
    %321 = vector.extract_strided_slice %306 {offsets = [0, 96], sizes = [2, 32], strides = [1, 1]} : vector<2x128xf32> to vector<2x32xf32>
    %322 = arith.negf %321 : vector<2x32xf32>
    %323 = math.exp %322 : vector<2x32xf32>
    %cst_79 = arith.constant 1.000000e+00 : f32
    %324 = vector.broadcast %cst_79 : f32 to vector<2x32xf32>
    %325 = arith.addf %324, %323 : vector<2x32xf32>
    %326 = arith.divf %324, %325 : vector<2x32xf32>
    %327 = arith.mulf %318, %293 : vector<2x32xf32>
    %328 = arith.mulf %312, %320 : vector<2x32xf32>
    %329 = arith.addf %327, %328 : vector<2x32xf32>
    %330 = math.tanh %329 : vector<2x32xf32>
    %331 = arith.mulf %326, %330 : vector<2x32xf32>
    %332 = arith.index_cast %c7_i32 : i32 to index
    %c0_80 = arith.constant 0 : index
    %c0_81 = arith.constant 0 : index
    %333 = vector.load %arg8[%332, %c0_80, %c0_81] : memref<8x2x32xf32, #tpu.memory_space<vmem>>, vector<1x2x32xf32>
    %334 = vector.shape_cast %333 : vector<1x2x32xf32> to vector<2x32xf32>
    %335 = vector.shape_cast %331 : vector<2x32xf32> to vector<1x2x32xf32>
    tpu.vector_store %arg8[%332, %c0_80, %c0_81], %335 {strides = array<i32>} : memref<8x2x32xf32, #tpu.memory_space<vmem>>, vector<1x2x32xf32>,
    %c8_i32 = arith.constant 8 : i32
    %c0_82 = arith.constant 0 : index
    %c0_83 = arith.constant 0 : index
    %336 = vector.load %arg10[%c0_82, %c0_83] : memref<2x32xf32, #tpu.memory_space<vmem>>, vector<2x32xf32>
    tpu.vector_store %arg10[%c0_82, %c0_83], %331 {strides = array<i32>} : memref<2x32xf32, #tpu.memory_space<vmem>>, vector<2x32xf32>,
    %c0_84 = arith.constant 0 : index
    %c0_85 = arith.constant 0 : index
    %337 = vector.load %arg11[%c0_84, %c0_85] : memref<2x32xf32, #tpu.memory_space<vmem>>, vector<2x32xf32>
    tpu.vector_store %arg11[%c0_84, %c0_85], %329 {strides = array<i32>} : memref<2x32xf32, #tpu.memory_space<vmem>>, vector<2x32xf32>,
    %c0_i32_86 = arith.constant 0 : i32
    %338 = arith.cmpi eq, %arg1, %c0_i32_86 : i32
    %339 = arith.extui %338 : i1 to i32
    %c0_i32_87 = arith.constant 0 : i32
    %340 = arith.cmpi ne, %339, %c0_i32_87 : i32
    scf.if %340 {
      %c0_88 = arith.constant 0 : index
      %c0_89 = arith.constant 0 : index
      %341 = vector.load %arg6[%c0_88, %c0_89] : memref<1x32xf32, #tpu.memory_space<vmem>>, vector<1x32xf32>
      %342 = vector.broadcast %341 : vector<1x32xf32> to vector<2x32xf32>
      %343 = arith.mulf %331, %342 : vector<2x32xf32>
      %cst_90 = arith.constant dense<0.000000e+00> : vector<2xf32>
      %344 = vector.multi_reduction <add>, %343, %cst_90 [1] : vector<2x32xf32> to vector<2xf32>
      %345 = vector.shape_cast %344 : vector<2xf32> to vector<2x1xf32>
      %c0_91 = arith.constant 0 : index
      %c0_92 = arith.constant 0 : index
      %346 = memref.load %arg7[%c0_91, %c0_92] : memref<1x1xf32, #tpu.memory_space<smem>>
      %347 = vector.broadcast %346 : f32 to vector<2x1xf32>
      %348 = arith.addf %345, %347 : vector<2x1xf32>
      %c0_93 = arith.constant 0 : index
      %c0_94 = arith.constant 0 : index
      %349 = vector.load %arg9[%c0_93, %c0_94] : memref<2x1xf32, #tpu.memory_space<vmem>>, vector<2x1xf32>
      tpu.vector_store %arg9[%c0_93, %c0_94], %348 {strides = array<i32>} : memref<2x1xf32, #tpu.memory_space<vmem>>, vector<2x1xf32>,
    } else {
    }
    return
  }
  func.func @transform_0(%arg0: i32, %arg1: i32) -> (i32, i32, i32) {
    %c0_i32 = arith.constant 0 : i32
    %c0_i32_0 = arith.constant 0 : i32
    return %arg1, %arg0, %c0_i32 : i32, i32, i32
  }
  func.func @transform_1(%arg0: i32, %arg1: i32) -> (i32, i32, i32) {
    %c0_i32 = arith.constant 0 : i32
    %c0_i32_0 = arith.constant 0 : i32
    %c0_i32_1 = arith.constant 0 : i32
    return %arg0, %c0_i32, %c0_i32_0 : i32, i32, i32
  }
  func.func @transform_2(%arg0: i32, %arg1: i32) -> (i32, i32, i32) {
    %c0_i32 = arith.constant 0 : i32
    %c0_i32_0 = arith.constant 0 : i32
    %c0_i32_1 = arith.constant 0 : i32
    return %arg0, %c0_i32, %c0_i32_0 : i32, i32, i32
  }
  func.func @transform_3(%arg0: i32, %arg1: i32) -> (i32, i32) {
    %c0_i32 = arith.constant 0 : i32
    %c0_i32_0 = arith.constant 0 : i32
    return %arg0, %c0_i32 : i32, i32
  }
  func.func @transform_4(%arg0: i32, %arg1: i32) -> (i32, i32) {
    %c0_i32 = arith.constant 0 : i32
    %c0_i32_0 = arith.constant 0 : i32
    %c0_i32_1 = arith.constant 0 : i32
    return %c0_i32, %c0_i32_0 : i32, i32
  }
  func.func @transform_5(%arg0: i32, %arg1: i32) -> (i32, i32) {
    %c0_i32 = arith.constant 0 : i32
    %c0_i32_0 = arith.constant 0 : i32
    %c0_i32_1 = arith.constant 0 : i32
    return %c0_i32, %c0_i32_0 : i32, i32
  }
  func.func @transform_6(%arg0: i32, %arg1: i32) -> (i32, i32, i32) {
    %c0_i32 = arith.constant 0 : i32
    %c0_i32_0 = arith.constant 0 : i32
    return %arg1, %arg0, %c0_i32 : i32, i32, i32
  }
  func.func @transform_7(%arg0: i32, %arg1: i32) -> (i32, i32) {
    %c0_i32 = arith.constant 0 : i32
    %c0_i32_0 = arith.constant 0 : i32
    return %arg0, %c0_i32 : i32, i32
  }
}

</mosaic_0001>

<bundles_post_ra>
// kernel: lstm_bayes_forward.1
= control target key start
LH: loop header
LB: loop body
LE: loop exit
PB: predicated region body
PF: predicated region fallthrough
CT: control target
= control target key end

     0   :  { %14 = vsyncpa [#allocation7], 0  ;;  %s12051_s0 = inlined_call_operand.vmem [shape: f32[8,2,4], index: 0, kind: input, shape index: {}]   ;;  %s12052_s1 = inlined_call_operand.hbm [shape: bf16[2,4,128], index: 1, kind: input, shape index: {}]   ;;  %s12053_s2 = inlined_call_operand.vmem [shape: bf16[2,32,128], index: 2, kind: input, shape index: {}]   ;;  %s12054_s3 = inlined_call_operand.vmem [shape: bf16[2,128], index: 3, kind: input, shape index: {}]   ;;  %s12055_s4 = inlined_call_operand.vmem [shape: f32[1,32], index: 4, kind: input, shape index: {}]   ;;  %s12056_s5 = inlined_call_operand.<no memory space> [shape: f32[1,1], index: 5, kind: input, shape index: {}]   ;;  %s12057_s6 = inlined_call_operand.hbm [shape: f32[8,2,32], index: 6, kind: output, shape index: {0}]   ;;  %s12058_s7 = inlined_call_operand.vmem [shape: f32[2,1], index: 7, kind: output, shape index: {1}]  }
   0x1   :  { %15 = vsyncpa [#allocation8], 0  ;;  %s10825_s24 = smov [#allocation6]   ;;  %s10777_s28 = scalar_lea.hbm %s12052_s1, 64 }
   0x2   :  { %s23_s25 = sshll.u32 %s10825_s24, 4  ;;  %p10778_p0 = scmp.ne.s32.totalorder %s12052_s1, %s10777_s28  ;;  %s24_s25 = int_to_ptr.vmem [resolvable:$true] %s23_s25 }
   0x3   :  { %p10781_p1 = scmp.lt.u32.totalorder %s10777_s28, %s12052_s1 }
   0x5   :  { %p10783_p2 = pnand %p10781_p1, %p10778_p0 }
   0x7   :  { %10786 = shalt.err (!%p10783_p2)
}
   0x8   :  { %s10787_s10 = scalar_lea.vmem %s24_s25, 64  ;;  %p10792_p4 = scmp.lt.s32.totalorder %s24_s25, %s24_s25 }
   0x9   :  { %p10788_p3 = scmp.ne.s32.totalorder %s24_s25, %s10787_s10  ;;  %p10793_p5 = scmp.lt.s32.totalorder %s10787_s10, %s10787_s10 }
   0xb   :  { %p10794_p6 = por %p10793_p5, %p10792_p4 }
   0xd   :  { %p10795_p7 = pnand %p10794_p6, %p10788_p3 }
   0xf   :  { %10798 = shalt.err (!%p10795_p7)
}
  0x10   :  { %s10826_s11 = smov 32   ;;  %s10827_s12 = smov 2  }
  0x11   :  { %29 = dma.hbm_to_vmem [thread:$0]  %s12052_s1, 64, %s24_s25, [#allocation7], %s10826_s11, %s10826_s11, %s10827_s12  }
  0x12   :  { %10821 = dma.done.wait [#allocation7], 64  }
  0x13   :  { %10822 = vsyncadd [#allocation7], 4294967232  ;;  %vm45_vm0 = vcmask 254976   ;;  %v10828_v0 = vmov 0.0|0.0   ;;  %v10829_v1 = vmov 0.0   ;;  %v122_v2 = vlaneseq  ;;  %v10914_v10 = vld [vmem:[%s12053_s2] sm:$0xff]  }
  0x14   :  { %9927 = vmatprep.subr.bf16.mxu0 %v10828_v0  ;;  %9963 = vmatprep.subr.bf16.mxu1 %v10828_v0  ;;  %46 = vst.msk [vmem:[#allocation2] sm:$0x3] %vm45_vm0, %v10829_v1  ;;  %47 = vst.msk [vmem:[#allocation3] sm:$0x3] %vm45_vm0, %v10829_v1  ;;  %vm10830_vm1 = vmmov 0   ;;  %v10832_v6 = vmov 0   ;;  %v8374_v14 = vunpack.c.l.bf16 %v10914_v10  ;;  %v8375_v15 = vunpack.c.h.bf16 %v10914_v10 }
  0x15   :  { %8879 = vmatprep.mubr.msk.f32.mxu0 %vm10830_vm1, %v10829_v1  ;;  %v10831_v3 = vmov 1966171168   ;;  %8945 = vmatprep.mubr.msk.f32.mxu1 %vm10830_vm1, %v10829_v1  ;;  %v10904_v5 = vshrl.u32 %v122_v2, 7  ;;  %v10833_v7 = vmov 2   ;;  %v10919_v11 = vld [vmem:[%s12053_s2 + $0x10] sm:$0xff]   ;;  %v10924_v12 = vld [vmem:[%s12053_s2 + $0x8] sm:$0xff]  }
  0x16   :  { %v343_v4 = vunpack.c.l.s4 %v10831_v3  ;;  %10677 = vset.pattern.permute.xlu0 %v10832_v6  ;;  %10679 = vset.pattern.permute.xlu1 %v10833_v7  ;;  %vm356_vm2 = vcmask 261120   ;;  %v8382_v16 = vunpack.c.l.bf16 %v10919_v11  ;;  %v8383_v17 = vunpack.c.h.bf16 %v10919_v11  ;;  %v72_v22 = vld [vmem:[%s12051_s0] sm:$0x3]  ;;  %v10951_v27 = vld [vmem:[%s12053_s2 + $0x18] sm:$0xff]   ;;  %s10837_s13 = smov 96   ;;  %s10838_s14 = smov [#allocation9]  }
  0x17   :  { %9929 = vmatpush3.bf16.msra.mxu0 %v10914_v10  ;;  %9965 = vmatpush3.bf16.msra.mxu1 %v10919_v11  ;;  %v8378_v20 = vunpack.c.l.bf16 %v10924_v12  ;;  %v8379_v21 = vunpack.c.h.bf16 %v10924_v12  ;;  %v10940_v23 = vsub.f32 %v8374_v14, %v8374_v14  ;;  %v10942_v24 = vsub.f32 %v8375_v15, %v8375_v15  ;;  %s8346_s1 = sshll.u32 %s10838_s14, 4  ;;  %s8347_s1 = int_to_ptr.vmem [resolvable:$true] %s8346_s1 }
  0x18   :  { %v344_v8 = vunpack.c.0.s8 %v343_v4  ;;  %9930 = vmatprep.subr.bf16.mxu0 %v10828_v0  ;;  %9966 = vmatprep.subr.bf16.mxu1 %v10828_v0  ;;  %v10944_v25 = vsub.f32 %v8382_v16, %v8382_v16  ;;  %v10946_v26 = vsub.f32 %v8383_v17, %v8383_v17  ;;  %v10834_v44 = vmov 1   ;;  %s10799_s15 = scalar_lea.vmem %s8347_s1, 256  ;;  %p10804_p9 = scmp.lt.s32.totalorder %s8347_s1, %s8347_s1 }
  0x19   :  { %82 = vperm.xlu0 %10677, %v72_v22   ;;  %v10955_v30 = vsub.f32 %v8378_v20, %v8378_v20  ;;  %v10957_v31 = vsub.f32 %v8379_v21, %v8379_v21  ;;  %208 = vperm.xlu1 %10679, %v72_v22   ;;  %v436_v33 = vand.u32 4294901760, %v10940_v23  ;;  %v442_v34 = vand.u32 4294901760, %v10942_v24  ;;  %p10800_p8 = scmp.ne.s32.totalorder %s8347_s1, %s10799_s15  ;;  %p10805_p10 = scmp.lt.s32.totalorder %s10799_s15, %s10799_s15 }
  0x1a   :  { %v10909_v9 = vsub.s32 %v344_v8, %v10904_v5  ;;  %v899_v35 = vand.u32 4294901760, %v10944_v25  ;;  %v905_v37 = vand.u32 4294901760, %v10946_v26  ;;  %v10835_v53 = vmov 3  }
  0x1b   :  { %v8362_v13 = vld.sshfl [vmem:[#allocation2] sm:$0x11 pattern:$0x75316420]  ;;  %9932 = vmatpush3.bf16.msra.mxu0 %v10924_v12  ;;  %9968 = vmatpush3.bf16.msra.mxu1 %v10951_v27  ;;  %v448_v38 = vand.u32 4294901760, %v10955_v30  ;;  %v454_v39 = vand.u32 4294901760, %v10957_v31  ;;  %v437_v41 = vsub.f32 %v10940_v23, %v436_v33  ;;  %v443_v42 = vsub.f32 %v10942_v24, %v442_v34  ;;  %p10806_p11 = por %p10805_p10, %p10804_p9 }
  0x1c   :  { %v348_v18 = vrot.slane %v8362_v13, %v10909_v9  ;;  %v341_v19 = vcombine.high %v8362_v13, %v8362_v13  ;;  %9933 = vmatprep.subr.bf16.mxu0 %v10828_v0  ;;  %9969 = vmatprep.subr.bf16.mxu1 %v10828_v0  ;;  %v900_v45 = vsub.f32 %v10944_v25, %v899_v35  ;;  %v332_v54 = vld [vmem:[#allocation3] sm:$0x3]  ;;  %v8386_v59 = vunpack.c.l.bf16 %v10951_v27 }
  0x1d   :  { %10678 = vset.pattern.permute.xlu0 %v10834_v44  ;;  %v906_v46 = vsub.f32 %v10946_v26, %v905_v37  ;;  %v449_v47 = vsub.f32 %v10955_v30, %v448_v38  ;;  %v455_v48 = vsub.f32 %v10957_v31, %v454_v39  ;;  %v438_v50 = vand.u32 4294901760, %v437_v41  ;;  %10680 = vset.pattern.permute.xlu1 %v10835_v53  ;;  %p10807_p12 = pnand %p10806_p11, %p10800_p8 }
  0x1e   :  { %v357_v28 = vsel %vm356_vm2, %v348_v18, 0  ;;  %v355_v29 = vrot.slane %v341_v19, %v10909_v9  ;;  %150 = vperm.xlu0 %10678, %v72_v22   ;;  %v444_v51 = vand.u32 4294901760, %v443_v42  ;;  %v901_v55 = vand.u32 4294901760, %v900_v45  ;;  %266 = vperm.xlu1 %10680, %v72_v22  }
  0x1f   :  { %v10961_v32 = vand.u32 4294901760, %v357_v28  ;;  %v907_v56 = vand.u32 4294901760, %v906_v46  ;;  %v450_v61 = vand.u32 4294901760, %v449_v47  ;;  %v456_v62 = vand.u32 4294901760, %v455_v48 }
  0x20   :  { %v820_v36 = vsel %vm356_vm2, %v355_v29, 0  ;;  %v11006_v60 = vpack.c.bf16 %v444_v51, %v438_v50  ;;  %v8387_v63 = vunpack.c.h.bf16 %v10951_v27  ;;  %v11013_v4 = vsub.f32 %v8386_v59, %v8386_v59 }
  0x21   :  { %v10973_v40 = vsub.f32 %v357_v28, %v10961_v32  ;;  %v10981_v43 = vand.u32 4294901760, %v820_v36  ;;  %v11015_v8 = vpack.c.bf16 %v907_v56, %v901_v55  ;;  %v11020_v16 = vpack.c.bf16 %v456_v62, %v450_v61 }
  0x22   :  { %1298 = vrot.lane.b32.xlu0 %v332_v54, %s10826_s11  ;;  %v916_v13 = vsub.f32 %v8387_v63, %v8387_v63  ;;  %10681 = vset.pattern.permute.xlu1 %v10832_v6  ;;  %v911_v15 = vand.u32 4294901760, %v11013_v4  ;;  %v11033_v22 = vpack.c.bf16 %v10942_v24, %v10940_v23  ;;  %v11043_v29 = vpack.c.bf16 %v10946_v26, %v10944_v25  ;;  %v66_v26 = vld [vmem:[#allocation6] sm:$0x3] }
  0x23   :  { %v426_v49 = vand.u32 4294901760, %v10973_v40  ;;  %v10998_v52 = vsub.f32 %v820_v36, %v10981_v43  ;;  %v11047_v36 = vpack.c.bf16 %v10957_v31, %v10955_v30  ;;  %v11077_v42 = vpack.c.bf16 %v442_v34, %v436_v33  ;;  %v67_v30 = vld [vmem:[#allocation6 + $0x2] sm:$0x3] }
  0x24   :  { %v917_v17 = vand.u32 4294901760, %v916_v13  ;;  %v912_v18 = vsub.f32 %v11013_v4, %v911_v15  ;;  %v11057_v41 = vpack.c.bf16 %v916_v13, %v11013_v4  ;;  %v11091_v23 = vpack.c.bf16 %v905_v37, %v899_v35 }
  0x25   :  { %v427_v57 = vsub.f32 %v10973_v40, %v426_v49  ;;  %v889_v58 = vand.u32 4294901760, %v10998_v52  ;;  %v11097_v24 = vpack.c.bf16 %v454_v39, %v448_v38  ;;  %v11144_v31 = vsub.s32 0, %v10904_v5  ;;  %v70_v39 = vld [vmem:[%s12054_s3] sm:$0x1]  ;;  %s10836_s3 = smov 64  }
  0x26   :  { %v918_v19 = vsub.f32 %v916_v13, %v917_v17  ;;  %v913_v20 = vand.u32 4294901760, %v912_v18  ;;  %v11107_v25 = vpack.c.bf16 %v917_v17, %v911_v15  ;;  %v69_v33 = vunpack.c.l.bf16 %v67_v30 }
  0x27   :  { %v428_v2 = vand.u32 4294901760, %v427_v57  ;;  %v890_v3 = vsub.f32 %v10998_v52, %v889_v58  ;;  %vm130_vm3 = vcmask 1041409   ;;  %v241_v37 = vsub.s32 2, %v10904_v5 }
  0x28   :  { %v919_v21 = vand.u32 4294901760, %v918_v19  ;;  %v129_v35 = vrot.slane %v69_v33, %v11144_v31  ;;  %v183_v38 = vsub.s32 1, %v10904_v5  ;;  %v11157_v50 = vunpack.c.l.bf16 %v70_v39 }
  0x29   :  { %8880 = vmatmul.mubr.f32.vlgmr.msra.gmra.mrb[0].mxu0 %v428_v2  ;;  %v891_v14 = vand.u32 4294901760, %v890_v3  ;;  %v246_v46 = vrot.slane %v69_v33, %v241_v37  ;;  %vm48_vm4 = vcmask 1024  }
  0x2a   :  { %9935 = vmatpush3.bf16.msra.mxu0 %v11006_v60  ;;  %8890 = vmatprep.mubr.msk.f32.mxu0 %vm10830_vm1, %v10829_v1  ;;  %v11036_v28 = vpack.c.bf16 %v919_v21, %v913_v20  ;;  %v188_v48 = vrot.slane %v69_v33, %v183_v38  ;;  %49 = vst.msk [vmem:[%s12058_s7] sm:$0x3] %vm48_vm4, %v10829_v1 }
  0x2b   :  { %8946 = vmatmul.mubr.f32.vlgmr.msra.gmra.mrb[0].mxu1 %v891_v14  ;;  %9936 = vmatprep.subr.bf16.mxu0 %v10828_v0 }
  0x2c   :  { %9971 = vmatpush3.bf16.msra.mxu1 %v11015_v8  ;;  %8956 = vmatprep.mubr.msk.f32.mxu1 %vm10830_vm1, %v10829_v1 }
  0x2d   :  { %9972 = vmatprep.subr.bf16.mxu1 %v10828_v0 }
  0x2e   :  { %9938 = vmatpush3.bf16.msra.mxu0 %v11020_v16 }
  0x2f   :  { %9939 = vmatprep.subr.bf16.mxu0 %v10828_v0 }
  0x30   :  { %9974 = vmatpush3.bf16.msra.mxu1 %v11036_v28 }
  0x31   :  { %8891 = vmatmul.mubr.f32.vlgmr.msra.gmra.mrb[0].mxu0 %v10961_v32  ;;  %9975 = vmatprep.subr.bf16.mxu1 %v10828_v0 }
  0x32   :  { %9941 = vmatpush3.bf16.msra.mxu0 %v11033_v22  ;;  %8901 = vmatprep.mubr.msk.f32.mxu0 %vm10830_vm1, %v10829_v1 }
  0x33   :  { %9942 = vmatprep.subr.bf16.mxu0 %v10828_v0  ;;  %8957 = vmatmul.mubr.f32.vlgmr.msra.gmra.mrb[0].mxu1 %v10981_v43 }
  0x34   :  { %9977 = vmatpush3.bf16.msra.mxu1 %v11043_v29  ;;  %8967 = vmatprep.mubr.msk.f32.mxu1 %vm10830_vm1, %v10829_v1 }
  0x35   :  { %9978 = vmatprep.subr.bf16.mxu1 %v10828_v0 }
  0x36   :  { %9944 = vmatpush3.bf16.msra.mxu0 %v11047_v36 }
  0x37   :  { %9945 = vmatprep.subr.bf16.mxu0 %v10828_v0 }
  0x38   :  { %9980 = vmatpush3.bf16.msra.mxu1 %v11057_v41 }
  0x39   :  { %8902 = vmatmul.mubr.f32.vlgmr.msra.gmra.mrb[0].mxu0 %v10973_v40  ;;  %9981 = vmatprep.subr.bf16.mxu1 %v10828_v0  ;;  %v299_v40 = vsub.s32 3, %v10904_v5 }
  0x3a   :  { %9947 = vmatpush3.bf16.msra.mxu0 %v10914_v10  ;;  %8912 = vmatprep.mubr.msk.f32.mxu0 %vm10830_vm1, %v10829_v1 }
  0x3b   :  { %9948 = vmatprep.subr.bf16.mxu0 %v10828_v0  ;;  %8968 = vmatmul.mubr.f32.vlgmr.msra.gmra.mrb[0].mxu1 %v10998_v52  ;;  %v304_v55 = vrot.slane %v69_v33, %v299_v40 }
  0x3c   :  { %9983 = vmatpush3.bf16.msra.mxu1 %v10919_v11  ;;  %8978 = vmatprep.mubr.msk.f32.mxu1 %vm10830_vm1, %v10829_v1 }
  0x3d   :  { %9984 = vmatprep.subr.bf16.mxu1 %v10828_v0 }
  0x3e   :  { %9950 = vmatpush3.bf16.msra.mxu0 %v10924_v12 }
  0x3f   :  { %9951 = vmatprep.subr.bf16.mxu0 %v10828_v0 }
  0x40   :  { %9986 = vmatpush3.bf16.msra.mxu1 %v10951_v27 }
  0x41   :  { %8913 = vmatmul.mubr.f32.vlgmr.msra.gmra.mrb[0].mxu0 %v426_v49  ;;  %9987 = vmatprep.subr.bf16.mxu1 %v10828_v0 }
  0x42   :  { %9953 = vmatpush3.bf16.msra.mxu0 %v11077_v42  ;;  %8923 = vmatprep.mubr.msk.f32.mxu0 %vm10830_vm1, %v10829_v1 }
  0x43   :  { %9954 = vmatprep.subr.bf16.mxu0 %v10828_v0  ;;  %8979 = vmatmul.mubr.f32.vlgmr.msra.gmra.mrb[0].mxu1 %v889_v58 }
  0x44   :  { %9989 = vmatpush3.bf16.msra.mxu1 %v11091_v23  ;;  %8989 = vmatprep.mubr.msk.f32.mxu1 %vm10830_vm1, %v10829_v1 }
  0x45   :  { %9990 = vmatprep.subr.bf16.mxu1 %v10828_v0 }
  0x46   :  { %9956 = vmatpush3.bf16.msra.mxu0 %v11097_v24 }
  0x47   :  { %9957 = vmatprep.subr.bf16.mxu0 %v10828_v0 }
  0x48   :  { %9992 = vmatpush3.bf16.msra.mxu1 %v11107_v25 }
  0x49   :  { %8924 = vmatmul.mubr.f32.vlgmr.msra.gmra.mrb[0].mxu0 %v10961_v32  ;;  %9993 = vmatprep.subr.bf16.mxu1 %v10828_v0 }
  0x4a   :  { %9959 = vmatpush3.bf16.msra.mxu0 %v10914_v10  ;;  %8934 = vmatprep.mubr.msk.f32.mxu0 %vm10830_vm1, %v10829_v1 }
  0x4b   :  { %9960 = vmatprep.subr.bf16.mxu0 %v10828_v0  ;;  %8990 = vmatmul.mubr.f32.vlgmr.msra.gmra.mrb[0].mxu1 %v10981_v43 }
  0x4c   :  { %9995 = vmatpush3.bf16.msra.mxu1 %v10919_v11  ;;  %9000 = vmatprep.mubr.msk.f32.mxu1 %vm10830_vm1, %v10829_v1 }
  0x4d   :  { %9996 = vmatprep.subr.bf16.mxu1 %v10828_v0 }
  0x4e   :  { %9962 = vmatpush3.bf16.msra.mxu0 %v10924_v12 }
  0x4f   :  { %9999 = vmatprep.subr.bf16.mxu0 %v10828_v0 }
  0x50   :  { %9998 = vmatpush3.bf16.msra.mxu1 %v10951_v27 }
  0x51   :  { %8935 = vmatmul.mubr.f32.vlgmr.msra.gmra.mrb[0].mxu0 %v10961_v32  ;;  %10035 = vmatprep.subr.bf16.mxu1 %v10828_v0  ;;  %v68_v32 = vunpack.c.l.bf16 %v66_v26 }
  0x52   :  { %10001 = vmatpush3.bf16.msra.mxu0 %v10914_v10  ;;  %9011 = vmatprep.mubr.msk.f32.mxu0 %vm10830_vm1, %v10829_v1 }
  0x53   :  { %10002 = vmatprep.subr.bf16.mxu0 %v10828_v0  ;;  %9001 = vmatmul.mubr.f32.vlgmr.msra.gmra.mrb[0].mxu1 %v10981_v43  ;;  %v125_v34 = vrot.slane %v68_v32, %v11144_v31  ;;  %v242_v45 = vrot.slane %v68_v32, %v241_v37  ;;  %v184_v47 = vrot.slane %v68_v32, %v183_v38 }
  0x54   :  { %10037 = vmatpush3.bf16.msra.mxu1 %v10919_v11  ;;  %9077 = vmatprep.mubr.msk.f32.mxu1 %vm10830_vm1, %v10829_v1  ;;  %v300_v54 = vrot.slane %v68_v32, %v299_v40 }
  0x55   :  { %10038 = vmatprep.subr.bf16.mxu1 %v10828_v0  ;;  %v11155_v43 = vsel %vm130_vm3, %v129_v35, %v125_v34  ;;  %v11161_v56 = vsel %vm130_vm3, %v246_v46, %v242_v45  ;;  %v11164_v5 = vsel %vm130_vm3, %v188_v48, %v184_v47 }
  0x56   :  { %10004 = vmatpush3.bf16.msra.mxu0 %v10924_v12  ;;  %v11168_v59 = vsel %vm130_vm3, %v304_v55, %v300_v54 }
  0x57   :  { %10005 = vmatprep.subr.bf16.mxu0 %v10828_v0 }
  0x58   :  { %10040 = vmatpush3.bf16.msra.mxu1 %v10951_v27 }
  0x59   :  { %10041 = vmatprep.subr.bf16.mxu1 %v10828_v0 }
  0x98   :  { %v83_v49 = vpop.permute.xlu0 %82  ;;  %v209_v52 = vpop.permute.xlu1 %208 }
  0x99   :  { %v133_v51 = vmul.f32 %v11155_v43, %v83_v49  ;;  %v249_v61 = vmul.f32 %v11161_v56, %v209_v52 }
  0x9b   :  { %v141_v57 = vadd.f32 %v133_v51, %v11157_v50 }
  0x9d   :  { %v151_v58 = vpop.permute.xlu0 %150  ;;  %v267_v63 = vpop.permute.xlu1 %266 }
  0x9e   :  { %v191_v62 = vmul.f32 %v11164_v5, %v151_v58  ;;  %v307_v3 = vmul.f32 %v11168_v59, %v267_v63 }
  0xa0   :  { %v199_v2 = vadd.f32 %v191_v62, %v141_v57 }
  0xa1   :  { %v1299_v39 = vpop.permute.xlu0 %1298 }
  0xa2   :  { %v257_v4 = vadd.f32 %v249_v61, %v199_v2  ;;  %v73_v61 = vld [vmem:[%s12051_s0 + $0x2] sm:$0x3] }
  0xa4   :  { %v315_v13 = vadd.f32 %v307_v3, %v257_v4 }
  0xa6   :  { %323 = vst [vmem:[#allocation4] sm:$0x3] %v315_v13 }
  0xad   :  { %v1283_v20 = vld [vmem:[#allocation4] sm:$0x3] }
 0x124   :  { %v816_v14 = vpop.f32.mrb[0].mxu0 }
 0x125   :  { %v8936_v15 = vpop.f32.mrb[1].mxu0 }
 0x126   :  { %v1279_v17 = vpop.f32.mrb[0].mxu1 }
 0x127   :  { %v1286_v18 = vrot.slane %v1279_v17, 7  ;;  %v9002_v19 = vpop.f32.mrb[1].mxu1 }
 0x129   :  { %v1287_v21 = vsel %vm130_vm3, %v1286_v18, %v816_v14 }
 0x12a   :  { %v1289_v26 = vadd.f32 %v1287_v21, %v1283_v20 }
 0x12c   :  { %10705 = vtanh.f32 %v1289_v26  ;;  %v8363_v32 = vmul.f32 -1.442695, %v1289_v26 }
 0x12e   :  { %10707 = vpow2.f32 %v8363_v32 }
 0x136   :  { %v10706_v30 = vpop.eup %10705 }
 0x137   :  { %1303 = vrot.lane.b32.xlu1 %v10706_v30, %s10836_s3 }
 0x138   :  { %v10708_v33 = vpop.eup %10707 }
 0x139   :  { %v1293_v34 = vadd.f32 1.0, %v10708_v33 }
 0x13b   :  { %10709 = vrcp.f32 %v1293_v34 }
 0x145   :  { %v10710_v35 = vpop.eup %10709 }
 0x146   :  { %v1301_v40 = vmul.f32 %v10710_v35, %v1299_v39 }
 0x1a9   :  { %v1304_v37 = vpop.permute.xlu1 %1303 }
 0x1aa   :  { %v1306_v38 = vmul.f32 %v10710_v35, %v1304_v37 }
 0x1ac   :  { %1308 = vrot.lane.b32.xlu1 %v1306_v38, %s10826_s11 }
 0x21e   :  { %v1309_v45 = vpop.permute.xlu1 %1308 }
 0x21f   :  { %v11176_v46 = vadd.f32 %v1309_v45, %v1301_v40 }
 0x221   :  { %10711 = vtanh.f32 %v11176_v46 }
 0x22b   :  { %v10712_v47 = vpop.eup %10711 }
 0x22c   :  { %1314 = vrot.lane.b32.xlu0 %v10712_v47, %s10836_s3 }
 0x29e   :  { %v1315_v48 = vpop.permute.xlu0 %1314 }
 0x29f   :  { %v11180_v49 = vmul.f32 %v10710_v35, %v1315_v48 }
 0x2a1   :  { %v1330_v51 = vrot.slane %v11180_v49, %v10909_v9 }
 0x2a3   :  { %v1331_v52 = vcombine.high %v1330_v51, %v1330_v51  ;;  %v1338_v54 = vrot.slane %v1330_v51, %v10909_v9 }
 0x2a5   :  { %v1349_v55 = vrot.slane %v1338_v54, %v11144_v31  ;;  %v1345_v57 = vrot.slane %v1331_v52, %v10909_v9 }
 0x2a7   :  { %1350 = vrot.lane.b32.xlu0 %v1349_v55, %s10826_s11  ;;  %v1818_v58 = vrot.slane %v1345_v57, %v11144_v31 }
 0x2a9   :  { %1819 = vrot.lane.b32.xlu1 %v1818_v58, %s10826_s11 }
 0x2ab   :  { %154 = vperm.xlu0 %10678, %v73_v61  }
 0x2ad   :  { %87 = vperm.xlu1 %10681, %v73_v61  }
 0x2af   :  { %10683 = vset.pattern.permute.xlu0 %v10835_v53 }
 0x2b0   :  { %270 = vperm.xlu0 %10683, %v73_v61  }
 0x2b1   :  { %10682 = vset.pattern.permute.xlu1 %v10833_v7 }
 0x2b2   :  { %212 = vperm.xlu1 %10682, %v73_v61  }
 0x2b4   :  { %10685 = vset.pattern.permute.xlu0 %v10834_v44 }
 0x2b6   :  { %10684 = vset.pattern.permute.xlu1 %v10832_v6 }
 0x319   :  { %v1351_v62 = vpop.permute.xlu0 %1350 }
 0x31a   :  { %v1352_v63 = vsel %vm356_vm2, %v1351_v62, 0 }
 0x31b   :  { %v11198_v2 = vand.u32 4294901760, %v1352_v63  ;;  %v1820_v3 = vpop.permute.xlu1 %1819 }
 0x31c   :  { %v1821_v4 = vsel %vm356_vm2, %v1820_v3, 0 }
 0x31d   :  { %v1420_v13 = vsub.f32 %v1352_v63, %v11198_v2  ;;  %v11202_v14 = vand.u32 4294901760, %v1821_v4 }
 0x31f   :  { %v1421_v15 = vand.u32 4294901760, %v1420_v13  ;;  %v1889_v17 = vsub.f32 %v1821_v4, %v11202_v14 }
 0x321   :  { %v1422_v18 = vsub.f32 %v1420_v13, %v1421_v15  ;;  %v1890_v19 = vand.u32 4294901760, %v1889_v17 }
 0x323   :  { %v1423_v20 = vand.u32 4294901760, %v1422_v18  ;;  %v1891_v21 = vsub.f32 %v1889_v17, %v1890_v19 }
 0x325   :  { %v1892_v26 = vand.u32 4294901760, %v1891_v21  ;;  %9012 = vmatmul.mubr.f32.vlgmr.msra.gmra.mrb[2].mxu0 %v1423_v20 }
 0x326   :  { %10007 = vmatpush3.bf16.msra.mxu0 %v11006_v60  ;;  %9022 = vmatprep.mubr.msk.f32.mxu0 %vm10830_vm1, %v10829_v1 }
 0x327   :  { %9078 = vmatmul.mubr.f32.vlgmr.msra.gmra.mrb[2].mxu1 %v1892_v26  ;;  %10008 = vmatprep.subr.bf16.mxu0 %v10828_v0 }
 0x328   :  { %10043 = vmatpush3.bf16.msra.mxu1 %v11015_v8  ;;  %9088 = vmatprep.mubr.msk.f32.mxu1 %vm10830_vm1, %v10829_v1 }
 0x329   :  { %10044 = vmatprep.subr.bf16.mxu1 %v10828_v0 }
 0x32a   :  { %10010 = vmatpush3.bf16.msra.mxu0 %v11020_v16  ;;  %v155_v30 = vpop.permute.xlu0 %154 }
 0x32b   :  { %10011 = vmatprep.subr.bf16.mxu0 %v10828_v0  ;;  %v192_v34 = vmul.f32 %v11164_v5, %v155_v30 }
 0x32c   :  { %10046 = vmatpush3.bf16.msra.mxu1 %v11036_v28  ;;  %v88_v32 = vpop.permute.xlu1 %87 }
 0x32d   :  { %v134_v33 = vmul.f32 %v11155_v43, %v88_v32  ;;  %9023 = vmatmul.mubr.f32.vlgmr.msra.gmra.mrb[2].mxu0 %v11198_v2  ;;  %10047 = vmatprep.subr.bf16.mxu1 %v10828_v0 }
 0x32e   :  { %10013 = vmatpush3.bf16.msra.mxu0 %v11033_v22  ;;  %9033 = vmatprep.mubr.msk.f32.mxu0 %vm10830_vm1, %v10829_v1 }
 0x32f   :  { %v142_v35 = vadd.f32 %v134_v33, %v11157_v50  ;;  %9089 = vmatmul.mubr.f32.vlgmr.msra.gmra.mrb[2].mxu1 %v11202_v14  ;;  %10014 = vmatprep.subr.bf16.mxu0 %v10828_v0  ;;  %v271_v37 = vpop.permute.xlu0 %270 }
 0x330   :  { %10049 = vmatpush3.bf16.msra.mxu1 %v11043_v29  ;;  %9099 = vmatprep.mubr.msk.f32.mxu1 %vm10830_vm1, %v10829_v1  ;;  %v308_v45 = vmul.f32 %v11168_v59, %v271_v37  ;;  %v74_v37 = vld [vmem:[%s12051_s0 + $0x4] sm:$0x3] }
 0x331   :  { %v200_v38 = vadd.f32 %v192_v34, %v142_v35  ;;  %v213_v39 = vpop.permute.xlu1 %212  ;;  %10050 = vmatprep.subr.bf16.mxu1 %v10828_v0 }
 0x332   :  { %v250_v40 = vmul.f32 %v11161_v56, %v213_v39  ;;  %10016 = vmatpush3.bf16.msra.mxu0 %v11047_v36 }
 0x333   :  { %10017 = vmatprep.subr.bf16.mxu0 %v10828_v0 }
 0x334   :  { %v258_v47 = vadd.f32 %v250_v40, %v200_v38  ;;  %10052 = vmatpush3.bf16.msra.mxu1 %v11057_v41 }
 0x335   :  { %9034 = vmatmul.mubr.f32.vlgmr.msra.gmra.mrb[2].mxu0 %v1420_v13  ;;  %10053 = vmatprep.subr.bf16.mxu1 %v10828_v0 }
 0x336   :  { %v316_v48 = vadd.f32 %v308_v45, %v258_v47  ;;  %10019 = vmatpush3.bf16.msra.mxu0 %v10914_v10  ;;  %9044 = vmatprep.mubr.msk.f32.mxu0 %vm10830_vm1, %v10829_v1 }
 0x337   :  { %9100 = vmatmul.mubr.f32.vlgmr.msra.gmra.mrb[2].mxu1 %v1889_v17  ;;  %10020 = vmatprep.subr.bf16.mxu0 %v10828_v0 }
 0x338   :  { %324 = vst [vmem:[#allocation4 + $0x2] sm:$0x3] %v316_v48  ;;  %10055 = vmatpush3.bf16.msra.mxu1 %v10919_v11  ;;  %9110 = vmatprep.mubr.msk.f32.mxu1 %vm10830_vm1, %v10829_v1 }
 0x339   :  { %10056 = vmatprep.subr.bf16.mxu1 %v10828_v0 }
 0x33a   :  { %10022 = vmatpush3.bf16.msra.mxu0 %v10924_v12 }
 0x33b   :  { %10023 = vmatprep.subr.bf16.mxu0 %v10828_v0 }
 0x33c   :  { %10058 = vmatpush3.bf16.msra.mxu1 %v10951_v27 }
 0x33d   :  { %9045 = vmatmul.mubr.f32.vlgmr.msra.gmra.mrb[2].mxu0 %v1421_v15  ;;  %10059 = vmatprep.subr.bf16.mxu1 %v10828_v0 }
 0x33e   :  { %10025 = vmatpush3.bf16.msra.mxu0 %v11077_v42  ;;  %9055 = vmatprep.mubr.msk.f32.mxu0 %vm10830_vm1, %v10829_v1 }
 0x33f   :  { %9111 = vmatmul.mubr.f32.vlgmr.msra.gmra.mrb[2].mxu1 %v1890_v19  ;;  %10026 = vmatprep.subr.bf16.mxu0 %v10828_v0  ;;  %v2285_v58 = vld [vmem:[#allocation4 + $0x2] sm:$0x3] }
 0x340   :  { %10061 = vmatpush3.bf16.msra.mxu1 %v11091_v23  ;;  %9121 = vmatprep.mubr.msk.f32.mxu1 %vm10830_vm1, %v10829_v1 }
 0x341   :  { %10062 = vmatprep.subr.bf16.mxu1 %v10828_v0 }
 0x342   :  { %10028 = vmatpush3.bf16.msra.mxu0 %v11097_v24 }
 0x343   :  { %10029 = vmatprep.subr.bf16.mxu0 %v10828_v0 }
 0x344   :  { %10064 = vmatpush3.bf16.msra.mxu1 %v11107_v25 }
 0x345   :  { %9056 = vmatmul.mubr.f32.vlgmr.msra.gmra.mrb[2].mxu0 %v11198_v2  ;;  %10065 = vmatprep.subr.bf16.mxu1 %v10828_v0 }
 0x346   :  { %10031 = vmatpush3.bf16.msra.mxu0 %v10914_v10  ;;  %9066 = vmatprep.mubr.msk.f32.mxu0 %vm10830_vm1, %v10829_v1 }
 0x347   :  { %9122 = vmatmul.mubr.f32.vlgmr.msra.gmra.mrb[2].mxu1 %v11202_v14  ;;  %10032 = vmatprep.subr.bf16.mxu0 %v10828_v0 }
 0x348   :  { %10067 = vmatpush3.bf16.msra.mxu1 %v10919_v11  ;;  %9132 = vmatprep.mubr.msk.f32.mxu1 %vm10830_vm1, %v10829_v1 }
 0x349   :  { %10068 = vmatprep.subr.bf16.mxu1 %v10828_v0 }
 0x34a   :  { %10034 = vmatpush3.bf16.msra.mxu0 %v10924_v12 }
 0x34b   :  { %10071 = vmatprep.subr.bf16.mxu0 %v10828_v0 }
 0x34c   :  { %10070 = vmatpush3.bf16.msra.mxu1 %v10951_v27 }
 0x34d   :  { %9067 = vmatmul.mubr.f32.vlgmr.msra.gmra.mrb[2].mxu0 %v11198_v2  ;;  %10107 = vmatprep.subr.bf16.mxu1 %v10828_v0 }
 0x34e   :  { %10073 = vmatpush3.bf16.msra.mxu0 %v10914_v10  ;;  %9143 = vmatprep.mubr.msk.f32.mxu0 %vm10830_vm1, %v10829_v1 }
 0x34f   :  { %9133 = vmatmul.mubr.f32.vlgmr.msra.gmra.mrb[2].mxu1 %v11202_v14  ;;  %10074 = vmatprep.subr.bf16.mxu0 %v10828_v0 }
 0x350   :  { %10109 = vmatpush3.bf16.msra.mxu1 %v10919_v11  ;;  %9209 = vmatprep.mubr.msk.f32.mxu1 %vm10830_vm1, %v10829_v1 }
 0x351   :  { %10110 = vmatprep.subr.bf16.mxu1 %v10828_v0 }
 0x352   :  { %10076 = vmatpush3.bf16.msra.mxu0 %v10924_v12 }
 0x353   :  { %10077 = vmatprep.subr.bf16.mxu0 %v10828_v0 }
 0x354   :  { %10112 = vmatpush3.bf16.msra.mxu1 %v10951_v27 }
 0x355   :  { %10113 = vmatprep.subr.bf16.mxu1 %v10828_v0 }
 0x420   :  { %v1811_v51 = vpop.f32.mrb[2].mxu0 }
 0x421   :  { %v9068_v52 = vpop.f32.mrb[3].mxu0 }
 0x422   :  { %v2280_v54 = vpop.f32.mrb[2].mxu1 }
 0x423   :  { %v2288_v55 = vrot.slane %v2280_v54, 7  ;;  %v9134_v57 = vpop.f32.mrb[3].mxu1 }
 0x425   :  { %v2289_v61 = vsel %vm130_vm3, %v2288_v55, %v1811_v51 }
 0x426   :  { %v2291_v62 = vadd.f32 %v2289_v61, %v2285_v58 }
 0x428   :  { %10713 = vtanh.f32 %v2291_v62  ;;  %v8364_v2 = vmul.f32 -1.442695, %v2291_v62 }
 0x42a   :  { %10715 = vpow2.f32 %v8364_v2 }
 0x432   :  { %v10714_v63 = vpop.eup %10713 }
 0x433   :  { %2301 = vrot.lane.b32.xlu1 %v10714_v63, %s10836_s3 }
 0x434   :  { %v10716_v3 = vpop.eup %10715 }
 0x435   :  { %v2295_v4 = vadd.f32 1.0, %v10716_v3 }
 0x437   :  { %10717 = vrcp.f32 %v2295_v4 }
 0x441   :  { %v10718_v13 = vpop.eup %10717 }
 0x442   :  { %v2299_v17 = vmul.f32 %v10718_v13, %v11176_v46 }
 0x4a5   :  { %v2302_v14 = vpop.permute.xlu1 %2301 }
 0x4a6   :  { %v2304_v15 = vmul.f32 %v10718_v13, %v2302_v14 }
 0x4a8   :  { %2306 = vrot.lane.b32.xlu1 %v2304_v15, %s10826_s11 }
 0x51a   :  { %v2307_v18 = vpop.permute.xlu1 %2306 }
 0x51b   :  { %v11292_v19 = vadd.f32 %v2307_v18, %v2299_v17 }
 0x51d   :  { %10719 = vtanh.f32 %v11292_v19 }
 0x527   :  { %v10720_v20 = vpop.eup %10719 }
 0x528   :  { %2312 = vrot.lane.b32.xlu0 %v10720_v20, %s10836_s3 }
 0x59a   :  { %v2313_v21 = vpop.permute.xlu0 %2312 }
 0x59b   :  { %v11296_v26 = vmul.f32 %v10718_v13, %v2313_v21 }
 0x59d   :  { %v2328_v30 = vrot.slane %v11296_v26, %v10909_v9 }
 0x59f   :  { %v2329_v32 = vcombine.high %v2328_v30, %v2328_v30  ;;  %v2336_v33 = vrot.slane %v2328_v30, %v10909_v9 }
 0x5a1   :  { %v2347_v34 = vrot.slane %v2336_v33, %v11144_v31  ;;  %v2343_v46 = vrot.slane %v2329_v32, %v10909_v9 }
 0x5a3   :  { %2348 = vrot.lane.b32.xlu0 %v2347_v34, %s10826_s11  ;;  %v2816_v35 = vrot.slane %v2343_v46, %v11144_v31 }
 0x5a5   :  { %2817 = vrot.lane.b32.xlu1 %v2816_v35, %s10826_s11 }
 0x5a7   :  { %158 = vperm.xlu0 %10685, %v74_v37  }
 0x5a9   :  { %92 = vperm.xlu1 %10684, %v74_v37  }
 0x5ad   :  { %10686 = vset.pattern.permute.xlu1 %v10833_v7 }
 0x5ae   :  { %216 = vperm.xlu1 %10686, %v74_v37  }
 0x5b2   :  { %10687 = vset.pattern.permute.xlu1 %v10835_v53 }
 0x5b3   :  { %274 = vperm.xlu1 %10687, %v74_v37  }
 0x5b7   :  { %10688 = vset.pattern.permute.xlu1 %v10832_v6 }
 0x615   :  { %v2349_v38 = vpop.permute.xlu0 %2348 }
 0x616   :  { %v2350_v39 = vsel %vm356_vm2, %v2349_v38, 0 }
 0x617   :  { %v11313_v40 = vand.u32 4294901760, %v2350_v39  ;;  %v2818_v45 = vpop.permute.xlu1 %2817 }
 0x618   :  { %v2819_v47 = vsel %vm356_vm2, %v2818_v45, 0 }
 0x619   :  { %v2418_v48 = vsub.f32 %v2350_v39, %v11313_v40  ;;  %v11317_v51 = vand.u32 4294901760, %v2819_v47 }
 0x61b   :  { %v2419_v52 = vand.u32 4294901760, %v2418_v48  ;;  %v2887_v54 = vsub.f32 %v2819_v47, %v11317_v51 }
 0x61d   :  { %v2420_v55 = vsub.f32 %v2418_v48, %v2419_v52  ;;  %v2888_v57 = vand.u32 4294901760, %v2887_v54 }
 0x61f   :  { %v2421_v58 = vand.u32 4294901760, %v2420_v55  ;;  %v2889_v61 = vsub.f32 %v2887_v54, %v2888_v57 }
 0x621   :  { %v2890_v62 = vand.u32 4294901760, %v2889_v61  ;;  %9144 = vmatmul.mubr.f32.vlgmr.msra.gmra.mrb[4].mxu0 %v2421_v58 }
 0x622   :  { %10079 = vmatpush3.bf16.msra.mxu0 %v11006_v60  ;;  %9154 = vmatprep.mubr.msk.f32.mxu0 %vm10830_vm1, %v10829_v1 }
 0x623   :  { %9210 = vmatmul.mubr.f32.vlgmr.msra.gmra.mrb[4].mxu1 %v2890_v62  ;;  %10080 = vmatprep.subr.bf16.mxu0 %v10828_v0 }
 0x624   :  { %10115 = vmatpush3.bf16.msra.mxu1 %v11015_v8  ;;  %9220 = vmatprep.mubr.msk.f32.mxu1 %vm10830_vm1, %v10829_v1 }
 0x625   :  { %10116 = vmatprep.subr.bf16.mxu1 %v10828_v0 }
 0x626   :  { %10082 = vmatpush3.bf16.msra.mxu0 %v11020_v16  ;;  %v159_v2 = vpop.permute.xlu0 %158 }
 0x627   :  { %10083 = vmatprep.subr.bf16.mxu0 %v10828_v0  ;;  %v193_v4 = vmul.f32 %v11164_v5, %v159_v2 }
 0x628   :  { %10118 = vmatpush3.bf16.msra.mxu1 %v11036_v28  ;;  %v93_v63 = vpop.permute.xlu1 %92 }
 0x629   :  { %9155 = vmatmul.mubr.f32.vlgmr.msra.gmra.mrb[4].mxu0 %v11313_v40  ;;  %10119 = vmatprep.subr.bf16.mxu1 %v10828_v0  ;;  %v135_v3 = vmul.f32 %v11155_v43, %v93_v63 }
 0x62a   :  { %10085 = vmatpush3.bf16.msra.mxu0 %v11033_v22  ;;  %9165 = vmatprep.mubr.msk.f32.mxu0 %vm10830_vm1, %v10829_v1 }
 0x62b   :  { %9221 = vmatmul.mubr.f32.vlgmr.msra.gmra.mrb[4].mxu1 %v11317_v51  ;;  %10086 = vmatprep.subr.bf16.mxu0 %v10828_v0 }
 0x62c   :  { %10121 = vmatpush3.bf16.msra.mxu1 %v11043_v29  ;;  %9231 = vmatprep.mubr.msk.f32.mxu1 %vm10830_vm1, %v10829_v1 }
 0x62d   :  { %10122 = vmatprep.subr.bf16.mxu1 %v10828_v0  ;;  %v217_v14 = vpop.permute.xlu1 %216 }
 0x62e   :  { %10088 = vmatpush3.bf16.msra.mxu0 %v11047_v36  ;;  %v251_v15 = vmul.f32 %v11161_v56, %v217_v14 }
 0x62f   :  { %10089 = vmatprep.subr.bf16.mxu0 %v10828_v0 }
 0x630   :  { %10124 = vmatpush3.bf16.msra.mxu1 %v11057_v41 }
 0x631   :  { %9166 = vmatmul.mubr.f32.vlgmr.msra.gmra.mrb[4].mxu0 %v2418_v48  ;;  %10125 = vmatprep.subr.bf16.mxu1 %v10828_v0 }
 0x632   :  { %10091 = vmatpush3.bf16.msra.mxu0 %v10914_v10  ;;  %9176 = vmatprep.mubr.msk.f32.mxu0 %vm10830_vm1, %v10829_v1  ;;  %v275_v17 = vpop.permute.xlu1 %274 }
 0x633   :  { %9232 = vmatmul.mubr.f32.vlgmr.msra.gmra.mrb[4].mxu1 %v2887_v54  ;;  %10092 = vmatprep.subr.bf16.mxu0 %v10828_v0  ;;  %v309_v18 = vmul.f32 %v11168_v59, %v275_v17 }
 0x634   :  { %10127 = vmatpush3.bf16.msra.mxu1 %v10919_v11  ;;  %9242 = vmatprep.mubr.msk.f32.mxu1 %vm10830_vm1, %v10829_v1 }
 0x635   :  { %10128 = vmatprep.subr.bf16.mxu1 %v10828_v0 }
 0x636   :  { %10094 = vmatpush3.bf16.msra.mxu0 %v10924_v12 }
 0x637   :  { %10095 = vmatprep.subr.bf16.mxu0 %v10828_v0 }
 0x638   :  { %10130 = vmatpush3.bf16.msra.mxu1 %v10951_v27 }
 0x639   :  { %9177 = vmatmul.mubr.f32.vlgmr.msra.gmra.mrb[4].mxu0 %v2419_v52  ;;  %10131 = vmatprep.subr.bf16.mxu1 %v10828_v0 }
 0x63a   :  { %10097 = vmatpush3.bf16.msra.mxu0 %v11077_v42  ;;  %9187 = vmatprep.mubr.msk.f32.mxu0 %vm10830_vm1, %v10829_v1 }
 0x63b   :  { %9243 = vmatmul.mubr.f32.vlgmr.msra.gmra.mrb[4].mxu1 %v2888_v57  ;;  %10098 = vmatprep.subr.bf16.mxu0 %v10828_v0 }
 0x63c   :  { %10133 = vmatpush3.bf16.msra.mxu1 %v11091_v23  ;;  %9253 = vmatprep.mubr.msk.f32.mxu1 %vm10830_vm1, %v10829_v1 }
 0x63d   :  { %10134 = vmatprep.subr.bf16.mxu1 %v10828_v0 }
 0x63e   :  { %10100 = vmatpush3.bf16.msra.mxu0 %v11097_v24 }
 0x63f   :  { %10101 = vmatprep.subr.bf16.mxu0 %v10828_v0 }
 0x640   :  { %10136 = vmatpush3.bf16.msra.mxu1 %v11107_v25 }
 0x641   :  { %9188 = vmatmul.mubr.f32.vlgmr.msra.gmra.mrb[4].mxu0 %v11313_v40  ;;  %10137 = vmatprep.subr.bf16.mxu1 %v10828_v0 }
 0x642   :  { %10103 = vmatpush3.bf16.msra.mxu0 %v10914_v10  ;;  %9198 = vmatprep.mubr.msk.f32.mxu0 %vm10830_vm1, %v10829_v1 }
 0x643   :  { %9254 = vmatmul.mubr.f32.vlgmr.msra.gmra.mrb[4].mxu1 %v11317_v51  ;;  %10104 = vmatprep.subr.bf16.mxu0 %v10828_v0 }
 0x644   :  { %10139 = vmatpush3.bf16.msra.mxu1 %v10919_v11  ;;  %9264 = vmatprep.mubr.msk.f32.mxu1 %vm10830_vm1, %v10829_v1 }
 0x645   :  { %10140 = vmatprep.subr.bf16.mxu1 %v10828_v0 }
 0x646   :  { %10106 = vmatpush3.bf16.msra.mxu0 %v10924_v12 }
 0x647   :  { %10143 = vmatprep.subr.bf16.mxu0 %v10828_v0 }
 0x648   :  { %10142 = vmatpush3.bf16.msra.mxu1 %v10951_v27 }
 0x649   :  { %9199 = vmatmul.mubr.f32.vlgmr.msra.gmra.mrb[4].mxu0 %v11313_v40  ;;  %10179 = vmatprep.subr.bf16.mxu1 %v10828_v0 }
 0x64a   :  { %10145 = vmatpush3.bf16.msra.mxu0 %v10914_v10  ;;  %9275 = vmatprep.mubr.msk.f32.mxu0 %vm10830_vm1, %v10829_v1  ;;  %v143_v10 = vadd.f32 %v135_v3, %v11157_v50  ;;  %v75_v3 = vld [vmem:[%s12051_s0 + $0x6] sm:$0x3] }
 0x64b   :  { %9265 = vmatmul.mubr.f32.vlgmr.msra.gmra.mrb[4].mxu1 %v11317_v51  ;;  %10146 = vmatprep.subr.bf16.mxu0 %v10828_v0 }
 0x64c   :  { %10181 = vmatpush3.bf16.msra.mxu1 %v10919_v11  ;;  %9341 = vmatprep.mubr.msk.f32.mxu1 %vm10830_vm1, %v10829_v1  ;;  %v201_v13 = vadd.f32 %v193_v4, %v143_v10 }
 0x64d   :  { %10182 = vmatprep.subr.bf16.mxu1 %v10828_v0 }
 0x64e   :  { %10148 = vmatpush3.bf16.msra.mxu0 %v10924_v12  ;;  %v259_v11 = vadd.f32 %v251_v15, %v201_v13 }
 0x64f   :  { %10149 = vmatprep.subr.bf16.mxu0 %v10828_v0 }
 0x650   :  { %10184 = vmatpush3.bf16.msra.mxu1 %v10951_v27  ;;  %v317_v20 = vadd.f32 %v309_v18, %v259_v11 }
 0x651   :  { %10185 = vmatprep.subr.bf16.mxu1 %v10828_v0 }
 0x652   :  { %325 = vst [vmem:[#allocation4 + $0x4] sm:$0x3] %v317_v20 }
 0x659   :  { %v3283_v34 = vld [vmem:[#allocation4 + $0x4] sm:$0x3] }
 0x71c   :  { %v2809_v21 = vpop.f32.mrb[4].mxu0 }
 0x71d   :  { %v9200_v30 = vpop.f32.mrb[5].mxu0 }
 0x71e   :  { %v3278_v32 = vpop.f32.mrb[4].mxu1 }
 0x71f   :  { %v3286_v12 = vrot.slane %v3278_v32, 7  ;;  %v9266_v33 = vpop.f32.mrb[5].mxu1 }
 0x721   :  { %v3287_v46 = vsel %vm130_vm3, %v3286_v12, %v2809_v21 }
 0x722   :  { %v3289_v35 = vadd.f32 %v3287_v46, %v3283_v34 }
 0x724   :  { %10721 = vtanh.f32 %v3289_v35  ;;  %v8365_v37 = vmul.f32 -1.442695, %v3289_v35 }
 0x726   :  { %10723 = vpow2.f32 %v8365_v37 }
 0x72e   :  { %v10722_v27 = vpop.eup %10721 }
 0x72f   :  { %3299 = vrot.lane.b32.xlu0 %v10722_v27, %s10836_s3 }
 0x730   :  { %v10724_v38 = vpop.eup %10723 }
 0x731   :  { %v3293_v39 = vadd.f32 1.0, %v10724_v38 }
 0x733   :  { %10725 = vrcp.f32 %v3293_v39 }
 0x73d   :  { %v10726_v40 = vpop.eup %10725 }
 0x73e   :  { %v3297_v48 = vmul.f32 %v10726_v40, %v11292_v19 }
 0x7a1   :  { %v3300_v45 = vpop.permute.xlu0 %3299 }
 0x7a2   :  { %v3302_v47 = vmul.f32 %v10726_v40, %v3300_v45 }
 0x7a4   :  { %3304 = vrot.lane.b32.xlu1 %v3302_v47, %s10826_s11 }
 0x816   :  { %v3305_v51 = vpop.permute.xlu1 %3304 }
 0x817   :  { %v11407_v52 = vadd.f32 %v3305_v51, %v3297_v48 }
 0x819   :  { %10727 = vtanh.f32 %v11407_v52 }
 0x823   :  { %v10728_v54 = vpop.eup %10727 }
 0x824   :  { %3310 = vrot.lane.b32.xlu0 %v10728_v54, %s10836_s3  ;;  %v11470_v54 = vld [vmem:[%s12053_s2] sm:$0xff]  }
 0x896   :  { %v3311_v55 = vpop.permute.xlu0 %3310 }
 0x897   :  { %v11411_v57 = vmul.f32 %v10726_v40, %v3311_v55  ;;  %v11479_v55 = vld [vmem:[%s12053_s2 + $0x10] sm:$0xff]  }
 0x899   :  { %v3326_v58 = vrot.slane %v11411_v57, %v10909_v9 }
 0x89b   :  { %v3327_v61 = vcombine.high %v3326_v58, %v3326_v58  ;;  %v3334_v62 = vrot.slane %v3326_v58, %v10909_v9  ;;  %v11488_v58 = vld [vmem:[%s12053_s2 + $0x8] sm:$0xff]  }
 0x89d   :  { %v3345_v63 = vrot.slane %v3334_v62, %v11144_v31  ;;  %v3341_v19 = vrot.slane %v3327_v61, %v10909_v9  ;;  %v11495_v61 = vld [vmem:[%s12053_s2 + $0x18] sm:$0xff]  }
 0x89f   :  { %3346 = vrot.lane.b32.xlu0 %v3345_v63, %s10826_s11  ;;  %v3814_v2 = vrot.slane %v3341_v19, %v11144_v31 }
 0x8a1   :  { %3815 = vrot.lane.b32.xlu1 %v3814_v2, %s10826_s11 }
 0x8a3   :  { %162 = vperm.xlu0 %10685, %v75_v3  }
 0x8a5   :  { %97 = vperm.xlu1 %10688, %v75_v3  }
 0x8a7   :  { %10690 = vset.pattern.permute.xlu0 %v10835_v53 }
 0x8a8   :  { %278 = vperm.xlu0 %10690, %v75_v3  }
 0x8a9   :  { %10689 = vset.pattern.permute.xlu1 %v10833_v7 }
 0x8aa   :  { %220 = vperm.xlu1 %10689, %v75_v3  }
 0x8ac   :  { %10692 = vset.pattern.permute.xlu0 %v10834_v44 }
 0x8ae   :  { %10691 = vset.pattern.permute.xlu1 %v10832_v6 }
 0x911   :  { %v3347_v4 = vpop.permute.xlu0 %3346 }
 0x912   :  { %v3348_v10 = vsel %vm356_vm2, %v3347_v4, 0 }
 0x913   :  { %v11429_v13 = vand.u32 4294901760, %v3348_v10  ;;  %v3816_v14 = vpop.permute.xlu1 %3815 }
 0x914   :  { %v3817_v15 = vsel %vm356_vm2, %v3816_v14, 0 }
 0x915   :  { %v3416_v11 = vsub.f32 %v3348_v10, %v11429_v13  ;;  %v11433_v17 = vand.u32 4294901760, %v3817_v15 }
 0x917   :  { %v3417_v18 = vand.u32 4294901760, %v3416_v11  ;;  %v3885_v20 = vsub.f32 %v3817_v15, %v11433_v17 }
 0x919   :  { %v3418_v21 = vsub.f32 %v3416_v11, %v3417_v18  ;;  %v3886_v30 = vand.u32 4294901760, %v3885_v20 }
 0x91b   :  { %v3419_v32 = vand.u32 4294901760, %v3418_v21  ;;  %v3887_v12 = vsub.f32 %v3885_v20, %v3886_v30 }
 0x91d   :  { %v3888_v33 = vand.u32 4294901760, %v3887_v12  ;;  %9276 = vmatmul.mubr.f32.vlgmr.msra.gmra.mrb[6].mxu0 %v3419_v32 }
 0x91e   :  { %10151 = vmatpush3.bf16.msra.mxu0 %v11006_v60  ;;  %9286 = vmatprep.mubr.msk.f32.mxu0 %vm10830_vm1, %v10829_v1 }
 0x91f   :  { %9342 = vmatmul.mubr.f32.vlgmr.msra.gmra.mrb[6].mxu1 %v3888_v33  ;;  %10152 = vmatprep.subr.bf16.mxu0 %v10828_v0 }
 0x920   :  { %10187 = vmatpush3.bf16.msra.mxu1 %v11015_v8  ;;  %9352 = vmatprep.mubr.msk.f32.mxu1 %vm10830_vm1, %v10829_v1 }
 0x921   :  { %10188 = vmatprep.subr.bf16.mxu1 %v10828_v0 }
 0x922   :  { %10154 = vmatpush3.bf16.msra.mxu0 %v11020_v16  ;;  %v163_v34 = vpop.permute.xlu0 %162 }
 0x923   :  { %10155 = vmatprep.subr.bf16.mxu0 %v10828_v0  ;;  %v194_v27 = vmul.f32 %v11164_v5, %v163_v34 }
 0x924   :  { %10190 = vmatpush3.bf16.msra.mxu1 %v11036_v28  ;;  %v98_v46 = vpop.permute.xlu1 %97 }
 0x925   :  { %v136_v35 = vmul.f32 %v11155_v43, %v98_v46  ;;  %9287 = vmatmul.mubr.f32.vlgmr.msra.gmra.mrb[6].mxu0 %v11429_v13  ;;  %10191 = vmatprep.subr.bf16.mxu1 %v10828_v0 }
 0x926   :  { %10157 = vmatpush3.bf16.msra.mxu0 %v11033_v22  ;;  %9297 = vmatprep.mubr.msk.f32.mxu0 %vm10830_vm1, %v10829_v1 }
 0x927   :  { %v144_v37 = vadd.f32 %v136_v35, %v11157_v50  ;;  %9353 = vmatmul.mubr.f32.vlgmr.msra.gmra.mrb[6].mxu1 %v11433_v17  ;;  %10158 = vmatprep.subr.bf16.mxu0 %v10828_v0  ;;  %v279_v38 = vpop.permute.xlu0 %278 }
 0x928   :  { %10193 = vmatpush3.bf16.msra.mxu1 %v11043_v29  ;;  %9363 = vmatprep.mubr.msk.f32.mxu1 %vm10830_vm1, %v10829_v1  ;;  %v310_v47 = vmul.f32 %v11168_v59, %v279_v38 }
 0x929   :  { %v202_v39 = vadd.f32 %v194_v27, %v144_v37  ;;  %v221_v40 = vpop.permute.xlu1 %220  ;;  %10194 = vmatprep.subr.bf16.mxu1 %v10828_v0 }
 0x92a   :  { %v252_v45 = vmul.f32 %v11161_v56, %v221_v40  ;;  %10160 = vmatpush3.bf16.msra.mxu0 %v11047_v36  ;;  %v76_v40 = vld [vmem:[%s12051_s0 + $0x8] sm:$0x3] }
 0x92b   :  { %10161 = vmatprep.subr.bf16.mxu0 %v10828_v0 }
 0x92c   :  { %v260_v48 = vadd.f32 %v252_v45, %v202_v39  ;;  %10196 = vmatpush3.bf16.msra.mxu1 %v11057_v41 }
 0x92d   :  { %9298 = vmatmul.mubr.f32.vlgmr.msra.gmra.mrb[6].mxu0 %v3416_v11  ;;  %10197 = vmatprep.subr.bf16.mxu1 %v10828_v0 }
 0x92e   :  { %v318_v51 = vadd.f32 %v310_v47, %v260_v48  ;;  %10163 = vmatpush3.bf16.msra.mxu0 %v11470_v54  ;;  %9308 = vmatprep.mubr.msk.f32.mxu0 %vm10830_vm1, %v10829_v1 }
 0x92f   :  { %9364 = vmatmul.mubr.f32.vlgmr.msra.gmra.mrb[6].mxu1 %v3885_v20  ;;  %10164 = vmatprep.subr.bf16.mxu0 %v10828_v0 }
 0x930   :  { %326 = vst [vmem:[#allocation4 + $0x6] sm:$0x3] %v318_v51  ;;  %10199 = vmatpush3.bf16.msra.mxu1 %v11479_v55  ;;  %9374 = vmatprep.mubr.msk.f32.mxu1 %vm10830_vm1, %v10829_v1 }
 0x931   :  { %10200 = vmatprep.subr.bf16.mxu1 %v10828_v0 }
 0x932   :  { %10166 = vmatpush3.bf16.msra.mxu0 %v11488_v58 }
 0x933   :  { %10167 = vmatprep.subr.bf16.mxu0 %v10828_v0 }
 0x934   :  { %10202 = vmatpush3.bf16.msra.mxu1 %v11495_v61 }
 0x935   :  { %9309 = vmatmul.mubr.f32.vlgmr.msra.gmra.mrb[6].mxu0 %v3417_v18  ;;  %10203 = vmatprep.subr.bf16.mxu1 %v10828_v0 }
 0x936   :  { %10169 = vmatpush3.bf16.msra.mxu0 %v11077_v42  ;;  %9319 = vmatprep.mubr.msk.f32.mxu0 %vm10830_vm1, %v10829_v1 }
 0x937   :  { %9375 = vmatmul.mubr.f32.vlgmr.msra.gmra.mrb[6].mxu1 %v3886_v30  ;;  %10170 = vmatprep.subr.bf16.mxu0 %v10828_v0  ;;  %v4281_v4 = vld [vmem:[#allocation4 + $0x6] sm:$0x3] }
 0x938   :  { %10205 = vmatpush3.bf16.msra.mxu1 %v11091_v23  ;;  %9385 = vmatprep.mubr.msk.f32.mxu1 %vm10830_vm1, %v10829_v1 }
 0x939   :  { %10206 = vmatprep.subr.bf16.mxu1 %v10828_v0 }
 0x93a   :  { %10172 = vmatpush3.bf16.msra.mxu0 %v11097_v24 }
 0x93b   :  { %10173 = vmatprep.subr.bf16.mxu0 %v10828_v0 }
 0x93c   :  { %10208 = vmatpush3.bf16.msra.mxu1 %v11107_v25 }
 0x93d   :  { %9320 = vmatmul.mubr.f32.vlgmr.msra.gmra.mrb[6].mxu0 %v11429_v13  ;;  %10209 = vmatprep.subr.bf16.mxu1 %v10828_v0 }
 0x93e   :  { %10175 = vmatpush3.bf16.msra.mxu0 %v11470_v54  ;;  %9330 = vmatprep.mubr.msk.f32.mxu0 %vm10830_vm1, %v10829_v1 }
 0x93f   :  { %9386 = vmatmul.mubr.f32.vlgmr.msra.gmra.mrb[6].mxu1 %v11433_v17  ;;  %10176 = vmatprep.subr.bf16.mxu0 %v10828_v0 }
 0x940   :  { %10211 = vmatpush3.bf16.msra.mxu1 %v11479_v55  ;;  %9396 = vmatprep.mubr.msk.f32.mxu1 %vm10830_vm1, %v10829_v1 }
 0x941   :  { %10212 = vmatprep.subr.bf16.mxu1 %v10828_v0 }
 0x942   :  { %10178 = vmatpush3.bf16.msra.mxu0 %v11488_v58 }
 0x943   :  { %10215 = vmatprep.subr.bf16.mxu0 %v10828_v0 }
 0x944   :  { %10214 = vmatpush3.bf16.msra.mxu1 %v11495_v61 }
 0x945   :  { %9331 = vmatmul.mubr.f32.vlgmr.msra.gmra.mrb[6].mxu0 %v11429_v13  ;;  %10251 = vmatprep.subr.bf16.mxu1 %v10828_v0 }
 0x946   :  { %10217 = vmatpush3.bf16.msra.mxu0 %v11470_v54  ;;  %9407 = vmatprep.mubr.msk.f32.mxu0 %vm10830_vm1, %v10829_v1 }
 0x947   :  { %9397 = vmatmul.mubr.f32.vlgmr.msra.gmra.mrb[6].mxu1 %v11433_v17  ;;  %10218 = vmatprep.subr.bf16.mxu0 %v10828_v0 }
 0x948   :  { %10253 = vmatpush3.bf16.msra.mxu1 %v11479_v55  ;;  %9473 = vmatprep.mubr.msk.f32.mxu1 %vm10830_vm1, %v10829_v1 }
 0x949   :  { %10254 = vmatprep.subr.bf16.mxu1 %v10828_v0 }
 0x94a   :  { %10220 = vmatpush3.bf16.msra.mxu0 %v11488_v58 }
 0x94b   :  { %10221 = vmatprep.subr.bf16.mxu0 %v10828_v0 }
 0x94c   :  { %10256 = vmatpush3.bf16.msra.mxu1 %v11495_v61 }
 0x94d   :  { %10257 = vmatprep.subr.bf16.mxu1 %v10828_v0 }
 0xa18   :  { %v3807_v62 = vpop.f32.mrb[6].mxu0 }
 0xa19   :  { %v9332_v63 = vpop.f32.mrb[7].mxu0 }
 0xa1a   :  { %v4276_v19 = vpop.f32.mrb[6].mxu1 }
 0xa1b   :  { %v4284_v2 = vrot.slane %v4276_v19, 7  ;;  %v9398_v3 = vpop.f32.mrb[7].mxu1 }
 0xa1d   :  { %v4285_v10 = vsel %vm130_vm3, %v4284_v2, %v3807_v62 }
 0xa1e   :  { %v4287_v13 = vadd.f32 %v4285_v10, %v4281_v4 }
 0xa20   :  { %10729 = vtanh.f32 %v4287_v13  ;;  %v8366_v15 = vmul.f32 -1.442695, %v4287_v13 }
 0xa22   :  { %10731 = vpow2.f32 %v8366_v15 }
 0xa2a   :  { %v10730_v14 = vpop.eup %10729 }
 0xa2b   :  { %4297 = vrot.lane.b32.xlu1 %v10730_v14, %s10836_s3 }
 0xa2c   :  { %v10732_v11 = vpop.eup %10731 }
 0xa2d   :  { %v4291_v17 = vadd.f32 1.0, %v10732_v11 }
 0xa2f   :  { %10733 = vrcp.f32 %v4291_v17 }
 0xa39   :  { %v10734_v18 = vpop.eup %10733 }
 0xa3a   :  { %v4295_v30 = vmul.f32 %v10734_v18, %v11407_v52 }
 0xa9d   :  { %v4298_v20 = vpop.permute.xlu1 %4297 }
 0xa9e   :  { %v4300_v21 = vmul.f32 %v10734_v18, %v4298_v20 }
 0xaa0   :  { %4302 = vrot.lane.b32.xlu1 %v4300_v21, %s10826_s11 }
 0xb12   :  { %v4303_v32 = vpop.permute.xlu1 %4302 }
 0xb13   :  { %v11543_v12 = vadd.f32 %v4303_v32, %v4295_v30 }
 0xb15   :  { %10735 = vtanh.f32 %v11543_v12 }
 0xb1f   :  { %v10736_v33 = vpop.eup %10735 }
 0xb20   :  { %4308 = vrot.lane.b32.xlu0 %v10736_v33, %s10836_s3 }
 0xb92   :  { %v4309_v34 = vpop.permute.xlu0 %4308 }
 0xb93   :  { %v11547_v46 = vmul.f32 %v10734_v18, %v4309_v34 }
 0xb95   :  { %v4324_v35 = vrot.slane %v11547_v46, %v10909_v9 }
 0xb97   :  { %v4325_v27 = vcombine.high %v4324_v35, %v4324_v35  ;;  %v4332_v37 = vrot.slane %v4324_v35, %v10909_v9 }
 0xb99   :  { %v4343_v38 = vrot.slane %v4332_v37, %v11144_v31  ;;  %v4339_v52 = vrot.slane %v4325_v27, %v10909_v9 }
 0xb9b   :  { %4344 = vrot.lane.b32.xlu0 %v4343_v38, %s10826_s11  ;;  %v4812_v39 = vrot.slane %v4339_v52, %v11144_v31 }
 0xb9d   :  { %4813 = vrot.lane.b32.xlu1 %v4812_v39, %s10826_s11 }
 0xb9f   :  { %166 = vperm.xlu0 %10692, %v76_v40  }
 0xba1   :  { %102 = vperm.xlu1 %10691, %v76_v40  }
 0xba5   :  { %10693 = vset.pattern.permute.xlu1 %v10833_v7 }
 0xba6   :  { %224 = vperm.xlu1 %10693, %v76_v40  }
 0xbaa   :  { %10694 = vset.pattern.permute.xlu1 %v10835_v53 }
 0xbab   :  { %282 = vperm.xlu1 %10694, %v76_v40  }
 0xbaf   :  { %10695 = vset.pattern.permute.xlu1 %v10832_v6 }
 0xc0d   :  { %v4345_v45 = vpop.permute.xlu0 %4344 }
 0xc0e   :  { %v4346_v47 = vsel %vm356_vm2, %v4345_v45, 0 }
 0xc0f   :  { %v11564_v48 = vand.u32 4294901760, %v4346_v47  ;;  %v4814_v51 = vpop.permute.xlu1 %4813 }
 0xc10   :  { %v4815_v62 = vsel %vm356_vm2, %v4814_v51, 0 }
 0xc11   :  { %v4414_v63 = vsub.f32 %v4346_v47, %v11564_v48  ;;  %v11568_v19 = vand.u32 4294901760, %v4815_v62 }
 0xc13   :  { %v4415_v2 = vand.u32 4294901760, %v4414_v63  ;;  %v4883_v3 = vsub.f32 %v4815_v62, %v11568_v19 }
 0xc15   :  { %v4416_v4 = vsub.f32 %v4414_v63, %v4415_v2  ;;  %v4884_v10 = vand.u32 4294901760, %v4883_v3 }
 0xc17   :  { %v4417_v13 = vand.u32 4294901760, %v4416_v4  ;;  %v4885_v14 = vsub.f32 %v4883_v3, %v4884_v10 }
 0xc19   :  { %v4886_v15 = vand.u32 4294901760, %v4885_v14  ;;  %9408 = vmatmul.mubr.f32.vlgmr.msra.gmra.mrb[8].mxu0 %v4417_v13 }
 0xc1a   :  { %10223 = vmatpush3.bf16.msra.mxu0 %v11006_v60  ;;  %9418 = vmatprep.mubr.msk.f32.mxu0 %vm10830_vm1, %v10829_v1 }
 0xc1b   :  { %9474 = vmatmul.mubr.f32.vlgmr.msra.gmra.mrb[8].mxu1 %v4886_v15  ;;  %10224 = vmatprep.subr.bf16.mxu0 %v10828_v0 }
 0xc1c   :  { %10259 = vmatpush3.bf16.msra.mxu1 %v11015_v8  ;;  %9484 = vmatprep.mubr.msk.f32.mxu1 %vm10830_vm1, %v10829_v1 }
 0xc1d   :  { %10260 = vmatprep.subr.bf16.mxu1 %v10828_v0 }
 0xc1e   :  { %10226 = vmatpush3.bf16.msra.mxu0 %v11020_v16  ;;  %v167_v17 = vpop.permute.xlu0 %166 }
 0xc1f   :  { %10227 = vmatprep.subr.bf16.mxu0 %v10828_v0  ;;  %v195_v20 = vmul.f32 %v11164_v5, %v167_v17 }
 0xc20   :  { %10262 = vmatpush3.bf16.msra.mxu1 %v11036_v28  ;;  %v103_v11 = vpop.permute.xlu1 %102 }
 0xc21   :  { %9419 = vmatmul.mubr.f32.vlgmr.msra.gmra.mrb[8].mxu0 %v11564_v48  ;;  %10263 = vmatprep.subr.bf16.mxu1 %v10828_v0  ;;  %v137_v18 = vmul.f32 %v11155_v43, %v103_v11 }
 0xc22   :  { %10229 = vmatpush3.bf16.msra.mxu0 %v11033_v22  ;;  %9429 = vmatprep.mubr.msk.f32.mxu0 %vm10830_vm1, %v10829_v1 }
 0xc23   :  { %9485 = vmatmul.mubr.f32.vlgmr.msra.gmra.mrb[8].mxu1 %v11568_v19  ;;  %10230 = vmatprep.subr.bf16.mxu0 %v10828_v0  ;;  %v145_v21 = vadd.f32 %v137_v18, %v11157_v50 }
 0xc24   :  { %10265 = vmatpush3.bf16.msra.mxu1 %v11043_v29  ;;  %9495 = vmatprep.mubr.msk.f32.mxu1 %vm10830_vm1, %v10829_v1 }
 0xc25   :  { %10266 = vmatprep.subr.bf16.mxu1 %v10828_v0  ;;  %v203_v30 = vadd.f32 %v195_v20, %v145_v21  ;;  %v225_v32 = vpop.permute.xlu1 %224 }
 0xc26   :  { %10232 = vmatpush3.bf16.msra.mxu0 %v11047_v36  ;;  %v253_v33 = vmul.f32 %v11161_v56, %v225_v32 }
 0xc27   :  { %10233 = vmatprep.subr.bf16.mxu0 %v10828_v0 }
 0xc28   :  { %10268 = vmatpush3.bf16.msra.mxu1 %v11057_v41  ;;  %v261_v34 = vadd.f32 %v253_v33, %v203_v30 }
 0xc29   :  { %9430 = vmatmul.mubr.f32.vlgmr.msra.gmra.mrb[8].mxu0 %v4414_v63  ;;  %10269 = vmatprep.subr.bf16.mxu1 %v10828_v0 }
 0xc2a   :  { %10235 = vmatpush3.bf16.msra.mxu0 %v11470_v54  ;;  %9440 = vmatprep.mubr.msk.f32.mxu0 %vm10830_vm1, %v10829_v1  ;;  %v283_v35 = vpop.permute.xlu1 %282 }
 0xc2b   :  { %9496 = vmatmul.mubr.f32.vlgmr.msra.gmra.mrb[8].mxu1 %v4883_v3  ;;  %10236 = vmatprep.subr.bf16.mxu0 %v10828_v0  ;;  %v311_v27 = vmul.f32 %v11168_v59, %v283_v35 }
 0xc2c   :  { %10271 = vmatpush3.bf16.msra.mxu1 %v11479_v55  ;;  %9506 = vmatprep.mubr.msk.f32.mxu1 %vm10830_vm1, %v10829_v1 }
 0xc2d   :  { %10272 = vmatprep.subr.bf16.mxu1 %v10828_v0  ;;  %v319_v37 = vadd.f32 %v311_v27, %v261_v34  ;;  %v77_v34 = vld [vmem:[%s12051_s0 + $0xa] sm:$0x3] }
 0xc2e   :  { %10238 = vmatpush3.bf16.msra.mxu0 %v11488_v58 }
 0xc2f   :  { %10239 = vmatprep.subr.bf16.mxu0 %v10828_v0  ;;  %327 = vst [vmem:[#allocation4 + $0x8] sm:$0x3] %v319_v37 }
 0xc30   :  { %10274 = vmatpush3.bf16.msra.mxu1 %v11495_v61 }
 0xc31   :  { %9441 = vmatmul.mubr.f32.vlgmr.msra.gmra.mrb[8].mxu0 %v4415_v2  ;;  %10275 = vmatprep.subr.bf16.mxu1 %v10828_v0 }
 0xc32   :  { %10241 = vmatpush3.bf16.msra.mxu0 %v11077_v42  ;;  %9451 = vmatprep.mubr.msk.f32.mxu0 %vm10830_vm1, %v10829_v1 }
 0xc33   :  { %9507 = vmatmul.mubr.f32.vlgmr.msra.gmra.mrb[8].mxu1 %v4884_v10  ;;  %10242 = vmatprep.subr.bf16.mxu0 %v10828_v0 }
 0xc34   :  { %10277 = vmatpush3.bf16.msra.mxu1 %v11091_v23  ;;  %9517 = vmatprep.mubr.msk.f32.mxu1 %vm10830_vm1, %v10829_v1 }
 0xc35   :  { %10278 = vmatprep.subr.bf16.mxu1 %v10828_v0 }
 0xc36   :  { %10244 = vmatpush3.bf16.msra.mxu0 %v11097_v24  ;;  %v5279_v47 = vld [vmem:[#allocation4 + $0x8] sm:$0x3] }
 0xc37   :  { %10245 = vmatprep.subr.bf16.mxu0 %v10828_v0 }
 0xc38   :  { %10280 = vmatpush3.bf16.msra.mxu1 %v11107_v25 }
 0xc39   :  { %9452 = vmatmul.mubr.f32.vlgmr.msra.gmra.mrb[8].mxu0 %v11564_v48  ;;  %10281 = vmatprep.subr.bf16.mxu1 %v10828_v0 }
 0xc3a   :  { %10247 = vmatpush3.bf16.msra.mxu0 %v11470_v54  ;;  %9462 = vmatprep.mubr.msk.f32.mxu0 %vm10830_vm1, %v10829_v1 }
 0xc3b   :  { %9518 = vmatmul.mubr.f32.vlgmr.msra.gmra.mrb[8].mxu1 %v11568_v19  ;;  %10248 = vmatprep.subr.bf16.mxu0 %v10828_v0 }
 0xc3c   :  { %10283 = vmatpush3.bf16.msra.mxu1 %v11479_v55  ;;  %9528 = vmatprep.mubr.msk.f32.mxu1 %vm10830_vm1, %v10829_v1 }
 0xc3d   :  { %10284 = vmatprep.subr.bf16.mxu1 %v10828_v0 }
 0xc3e   :  { %10250 = vmatpush3.bf16.msra.mxu0 %v11488_v58 }
 0xc3f   :  { %10287 = vmatprep.subr.bf16.mxu0 %v10828_v0 }
 0xc40   :  { %10286 = vmatpush3.bf16.msra.mxu1 %v11495_v61 }
 0xc41   :  { %9463 = vmatmul.mubr.f32.vlgmr.msra.gmra.mrb[8].mxu0 %v11564_v48  ;;  %10323 = vmatprep.subr.bf16.mxu1 %v10828_v0 }
 0xc42   :  { %10289 = vmatpush3.bf16.msra.mxu0 %v11470_v54  ;;  %9539 = vmatprep.mubr.msk.f32.mxu0 %vm10830_vm1, %v10829_v1 }
 0xc43   :  { %9529 = vmatmul.mubr.f32.vlgmr.msra.gmra.mrb[8].mxu1 %v11568_v19  ;;  %10290 = vmatprep.subr.bf16.mxu0 %v10828_v0 }
 0xc44   :  { %10325 = vmatpush3.bf16.msra.mxu1 %v11479_v55  ;;  %9605 = vmatprep.mubr.msk.f32.mxu1 %vm10830_vm1, %v10829_v1 }
 0xc45   :  { %10326 = vmatprep.subr.bf16.mxu1 %v10828_v0 }
 0xc46   :  { %10292 = vmatpush3.bf16.msra.mxu0 %v11488_v58 }
 0xc47   :  { %10293 = vmatprep.subr.bf16.mxu0 %v10828_v0 }
 0xc48   :  { %10328 = vmatpush3.bf16.msra.mxu1 %v11495_v61 }
 0xc49   :  { %10329 = vmatprep.subr.bf16.mxu1 %v10828_v0 }
 0xd14   :  { %v4805_v38 = vpop.f32.mrb[8].mxu0 }
 0xd15   :  { %v9464_v52 = vpop.f32.mrb[9].mxu0 }
 0xd16   :  { %v5274_v39 = vpop.f32.mrb[8].mxu1 }
 0xd17   :  { %v5282_v40 = vrot.slane %v5274_v39, 7  ;;  %v9530_v45 = vpop.f32.mrb[9].mxu1 }
 0xd19   :  { %v5283_v48 = vsel %vm130_vm3, %v5282_v40, %v4805_v38 }
 0xd1a   :  { %v5285_v51 = vadd.f32 %v5283_v48, %v5279_v47 }
 0xd1c   :  { %10737 = vtanh.f32 %v5285_v51  ;;  %v8367_v63 = vmul.f32 -1.442695, %v5285_v51 }
 0xd1e   :  { %10739 = vpow2.f32 %v8367_v63 }
 0xd26   :  { %v10738_v62 = vpop.eup %10737 }
 0xd27   :  { %5295 = vrot.lane.b32.xlu0 %v10738_v62, %s10836_s3 }
 0xd28   :  { %v10740_v19 = vpop.eup %10739 }
 0xd29   :  { %v5289_v2 = vadd.f32 1.0, %v10740_v19 }
 0xd2b   :  { %10741 = vrcp.f32 %v5289_v2 }
 0xd35   :  { %v10742_v3 = vpop.eup %10741 }
 0xd36   :  { %v5293_v13 = vmul.f32 %v10742_v3, %v11543_v12 }
 0xd99   :  { %v5296_v4 = vpop.permute.xlu0 %5295 }
 0xd9a   :  { %v5298_v10 = vmul.f32 %v10742_v3, %v5296_v4 }
 0xd9c   :  { %5300 = vrot.lane.b32.xlu1 %v5298_v10, %s10826_s11 }
 0xe0e   :  { %v5301_v14 = vpop.permute.xlu1 %5300 }
 0xe0f   :  { %v11658_v15 = vadd.f32 %v5301_v14, %v5293_v13 }
 0xe11   :  { %10743 = vtanh.f32 %v11658_v15 }
 0xe1b   :  { %v10744_v11 = vpop.eup %10743 }
 0xe1c   :  { %5306 = vrot.lane.b32.xlu0 %v10744_v11, %s10836_s3 }
 0xe8e   :  { %v5307_v17 = vpop.permute.xlu0 %5306 }
 0xe8f   :  { %v11662_v18 = vmul.f32 %v10742_v3, %v5307_v17 }
 0xe91   :  { %v5322_v20 = vrot.slane %v11662_v18, %v10909_v9 }
 0xe93   :  { %v5323_v21 = vcombine.high %v5322_v20, %v5322_v20  ;;  %v5330_v30 = vrot.slane %v5322_v20, %v10909_v9 }
 0xe95   :  { %v5341_v32 = vrot.slane %v5330_v30, %v11144_v31  ;;  %v5337_v12 = vrot.slane %v5323_v21, %v10909_v9 }
 0xe97   :  { %5342 = vrot.lane.b32.xlu0 %v5341_v32, %s10826_s11  ;;  %v5810_v33 = vrot.slane %v5337_v12, %v11144_v31 }
 0xe99   :  { %5811 = vrot.lane.b32.xlu1 %v5810_v33, %s10826_s11 }
 0xe9b   :  { %170 = vperm.xlu0 %10692, %v77_v34  }
 0xe9d   :  { %107 = vperm.xlu1 %10695, %v77_v34  }
 0xe9f   :  { %10697 = vset.pattern.permute.xlu0 %v10835_v53 }
 0xea0   :  { %286 = vperm.xlu0 %10697, %v77_v34  }
 0xea1   :  { %10696 = vset.pattern.permute.xlu1 %v10833_v7 }
 0xea2   :  { %228 = vperm.xlu1 %10696, %v77_v34  }
 0xea4   :  { %10699 = vset.pattern.permute.xlu0 %v10834_v44 }
 0xea6   :  { %10698 = vset.pattern.permute.xlu1 %v10832_v6 }
 0xf09   :  { %v5343_v35 = vpop.permute.xlu0 %5342 }
 0xf0a   :  { %v5344_v27 = vsel %vm356_vm2, %v5343_v35, 0 }
 0xf0b   :  { %v11680_v37 = vand.u32 4294901760, %v5344_v27  ;;  %v5812_v38 = vpop.permute.xlu1 %5811 }
 0xf0c   :  { %v5813_v52 = vsel %vm356_vm2, %v5812_v38, 0 }
 0xf0d   :  { %v5412_v39 = vsub.f32 %v5344_v27, %v11680_v37  ;;  %v11684_v40 = vand.u32 4294901760, %v5813_v52 }
 0xf0f   :  { %v5413_v45 = vand.u32 4294901760, %v5412_v39  ;;  %v5881_v47 = vsub.f32 %v5813_v52, %v11684_v40 }
 0xf11   :  { %v5414_v48 = vsub.f32 %v5412_v39, %v5413_v45  ;;  %v5882_v51 = vand.u32 4294901760, %v5881_v47 }
 0xf13   :  { %v5415_v44 = vand.u32 4294901760, %v5414_v48  ;;  %v5883_v62 = vsub.f32 %v5881_v47, %v5882_v51 }
 0xf15   :  { %v5884_v63 = vand.u32 4294901760, %v5883_v62  ;;  %9540 = vmatmul.mubr.f32.vlgmr.msra.gmra.mrb[10].mxu0 %v5415_v44 }
 0xf16   :  { %10295 = vmatpush3.bf16.msra.mxu0 %v11006_v60  ;;  %9550 = vmatprep.mubr.msk.f32.mxu0 %vm10830_vm1, %v10829_v1 }
 0xf17   :  { %9606 = vmatmul.mubr.f32.vlgmr.msra.gmra.mrb[10].mxu1 %v5884_v63  ;;  %10296 = vmatprep.subr.bf16.mxu0 %v10828_v0 }
 0xf18   :  { %10331 = vmatpush3.bf16.msra.mxu1 %v11015_v8  ;;  %9616 = vmatprep.mubr.msk.f32.mxu1 %vm10830_vm1, %v10829_v1 }
 0xf19   :  { %10332 = vmatprep.subr.bf16.mxu1 %v10828_v0 }
 0xf1a   :  { %10298 = vmatpush3.bf16.msra.mxu0 %v11020_v16  ;;  %v171_v19 = vpop.permute.xlu0 %170 }
 0xf1b   :  { %10299 = vmatprep.subr.bf16.mxu0 %v10828_v0  ;;  %v196_v4 = vmul.f32 %v11164_v5, %v171_v19 }
 0xf1c   :  { %10334 = vmatpush3.bf16.msra.mxu1 %v11036_v28  ;;  %v108_v2 = vpop.permute.xlu1 %107 }
 0xf1d   :  { %v138_v3 = vmul.f32 %v11155_v43, %v108_v2  ;;  %9551 = vmatmul.mubr.f32.vlgmr.msra.gmra.mrb[10].mxu0 %v11680_v37  ;;  %10335 = vmatprep.subr.bf16.mxu1 %v10828_v0 }
 0xf1e   :  { %10301 = vmatpush3.bf16.msra.mxu0 %v11033_v22  ;;  %9561 = vmatprep.mubr.msk.f32.mxu0 %vm10830_vm1, %v10829_v1 }
 0xf1f   :  { %v146_v10 = vadd.f32 %v138_v3, %v11157_v50  ;;  %9617 = vmatmul.mubr.f32.vlgmr.msra.gmra.mrb[10].mxu1 %v11684_v40  ;;  %10302 = vmatprep.subr.bf16.mxu0 %v10828_v0  ;;  %v287_v13 = vpop.permute.xlu0 %286 }
 0xf20   :  { %10337 = vmatpush3.bf16.msra.mxu1 %v11043_v29  ;;  %9627 = vmatprep.mubr.msk.f32.mxu1 %vm10830_vm1, %v10829_v1  ;;  %v312_v20 = vmul.f32 %v11168_v59, %v287_v13 }
 0xf21   :  { %v204_v14 = vadd.f32 %v196_v4, %v146_v10  ;;  %v229_v11 = vpop.permute.xlu1 %228  ;;  %10338 = vmatprep.subr.bf16.mxu1 %v10828_v0 }
 0xf22   :  { %v254_v17 = vmul.f32 %v11161_v56, %v229_v11  ;;  %10304 = vmatpush3.bf16.msra.mxu0 %v11047_v36 }
 0xf23   :  { %10305 = vmatprep.subr.bf16.mxu0 %v10828_v0 }
 0xf24   :  { %v262_v21 = vadd.f32 %v254_v17, %v204_v14  ;;  %10340 = vmatpush3.bf16.msra.mxu1 %v11057_v41  ;;  %v78_v17 = vld [vmem:[%s12051_s0 + $0xc] sm:$0x3] }
 0xf25   :  { %9562 = vmatmul.mubr.f32.vlgmr.msra.gmra.mrb[10].mxu0 %v5412_v39  ;;  %10341 = vmatprep.subr.bf16.mxu1 %v10828_v0 }
 0xf26   :  { %v320_v30 = vadd.f32 %v312_v20, %v262_v21  ;;  %10307 = vmatpush3.bf16.msra.mxu0 %v11470_v54  ;;  %9572 = vmatprep.mubr.msk.f32.mxu0 %vm10830_vm1, %v10829_v1 }
 0xf27   :  { %9628 = vmatmul.mubr.f32.vlgmr.msra.gmra.mrb[10].mxu1 %v5881_v47  ;;  %10308 = vmatprep.subr.bf16.mxu0 %v10828_v0 }
 0xf28   :  { %328 = vst [vmem:[#allocation4 + $0xa] sm:$0x3] %v320_v30  ;;  %10343 = vmatpush3.bf16.msra.mxu1 %v11479_v55  ;;  %9638 = vmatprep.mubr.msk.f32.mxu1 %vm10830_vm1, %v10829_v1 }
 0xf29   :  { %10344 = vmatprep.subr.bf16.mxu1 %v10828_v0 }
 0xf2a   :  { %10310 = vmatpush3.bf16.msra.mxu0 %v11488_v58 }
 0xf2b   :  { %10311 = vmatprep.subr.bf16.mxu0 %v10828_v0 }
 0xf2c   :  { %10346 = vmatpush3.bf16.msra.mxu1 %v11495_v61 }
 0xf2d   :  { %9573 = vmatmul.mubr.f32.vlgmr.msra.gmra.mrb[10].mxu0 %v5413_v45  ;;  %10347 = vmatprep.subr.bf16.mxu1 %v10828_v0 }
 0xf2e   :  { %10313 = vmatpush3.bf16.msra.mxu0 %v11077_v42  ;;  %9583 = vmatprep.mubr.msk.f32.mxu0 %vm10830_vm1, %v10829_v1 }
 0xf2f   :  { %9639 = vmatmul.mubr.f32.vlgmr.msra.gmra.mrb[10].mxu1 %v5882_v51  ;;  %10314 = vmatprep.subr.bf16.mxu0 %v10828_v0  ;;  %v6277_v27 = vld [vmem:[#allocation4 + $0xa] sm:$0x3] }
 0xf30   :  { %10349 = vmatpush3.bf16.msra.mxu1 %v11091_v23  ;;  %9649 = vmatprep.mubr.msk.f32.mxu1 %vm10830_vm1, %v10829_v1 }
 0xf31   :  { %10350 = vmatprep.subr.bf16.mxu1 %v10828_v0 }
 0xf32   :  { %10316 = vmatpush3.bf16.msra.mxu0 %v11097_v24 }
 0xf33   :  { %10317 = vmatprep.subr.bf16.mxu0 %v10828_v0 }
 0xf34   :  { %10352 = vmatpush3.bf16.msra.mxu1 %v11107_v25 }
 0xf35   :  { %9584 = vmatmul.mubr.f32.vlgmr.msra.gmra.mrb[10].mxu0 %v11680_v37  ;;  %10353 = vmatprep.subr.bf16.mxu1 %v10828_v0 }
 0xf36   :  { %10319 = vmatpush3.bf16.msra.mxu0 %v11470_v54  ;;  %9594 = vmatprep.mubr.msk.f32.mxu0 %vm10830_vm1, %v10829_v1 }
 0xf37   :  { %9650 = vmatmul.mubr.f32.vlgmr.msra.gmra.mrb[10].mxu1 %v11684_v40  ;;  %10320 = vmatprep.subr.bf16.mxu0 %v10828_v0 }
 0xf38   :  { %10355 = vmatpush3.bf16.msra.mxu1 %v11479_v55  ;;  %9660 = vmatprep.mubr.msk.f32.mxu1 %vm10830_vm1, %v10829_v1 }
 0xf39   :  { %10356 = vmatprep.subr.bf16.mxu1 %v10828_v0 }
 0xf3a   :  { %10322 = vmatpush3.bf16.msra.mxu0 %v11488_v58 }
 0xf3b   :  { %10359 = vmatprep.subr.bf16.mxu0 %v10828_v0 }
 0xf3c   :  { %10358 = vmatpush3.bf16.msra.mxu1 %v11495_v61 }
 0xf3d   :  { %9595 = vmatmul.mubr.f32.vlgmr.msra.gmra.mrb[10].mxu0 %v11680_v37  ;;  %10395 = vmatprep.subr.bf16.mxu1 %v10828_v0 }
 0xf3e   :  { %10361 = vmatpush3.bf16.msra.mxu0 %v11470_v54  ;;  %9671 = vmatprep.mubr.msk.f32.mxu0 %vm10830_vm1, %v10829_v1 }
 0xf3f   :  { %9661 = vmatmul.mubr.f32.vlgmr.msra.gmra.mrb[10].mxu1 %v11684_v40  ;;  %10362 = vmatprep.subr.bf16.mxu0 %v10828_v0 }
 0xf40   :  { %10397 = vmatpush3.bf16.msra.mxu1 %v11479_v55  ;;  %9737 = vmatprep.mubr.msk.f32.mxu1 %vm10830_vm1, %v10829_v1 }
 0xf41   :  { %10398 = vmatprep.subr.bf16.mxu1 %v10828_v0 }
 0xf42   :  { %10364 = vmatpush3.bf16.msra.mxu0 %v11488_v58 }
 0xf43   :  { %10365 = vmatprep.subr.bf16.mxu0 %v10828_v0 }
 0xf44   :  { %10400 = vmatpush3.bf16.msra.mxu1 %v11495_v61 }
 0xf45   :  { %10401 = vmatprep.subr.bf16.mxu1 %v10828_v0 }
0x1010   :  { %v5803_v32 = vpop.f32.mrb[10].mxu0 }
0x1011   :  { %v9596_v12 = vpop.f32.mrb[11].mxu0 }
0x1012   :  { %v6272_v33 = vpop.f32.mrb[10].mxu1 }
0x1013   :  { %v6280_v34 = vrot.slane %v6272_v33, 7  ;;  %v9662_v35 = vpop.f32.mrb[11].mxu1 }
0x1015   :  { %v6281_v37 = vsel %vm130_vm3, %v6280_v34, %v5803_v32 }
0x1016   :  { %v6283_v38 = vadd.f32 %v6281_v37, %v6277_v27 }
0x1018   :  { %10745 = vtanh.f32 %v6283_v38  ;;  %v8368_v39 = vmul.f32 -1.442695, %v6283_v38 }
0x101a   :  { %10747 = vpow2.f32 %v8368_v39 }
0x1022   :  { %v10746_v52 = vpop.eup %10745 }
0x1023   :  { %6293 = vrot.lane.b32.xlu1 %v10746_v52, %s10836_s3 }
0x1024   :  { %v10748_v40 = vpop.eup %10747 }
0x1025   :  { %v6287_v45 = vadd.f32 1.0, %v10748_v40 }
0x1027   :  { %10749 = vrcp.f32 %v6287_v45 }
0x1031   :  { %v10750_v47 = vpop.eup %10749 }
0x1032   :  { %v6291_v44 = vmul.f32 %v10750_v47, %v11658_v15 }
0x1095   :  { %v6294_v48 = vpop.permute.xlu1 %6293 }
0x1096   :  { %v6296_v51 = vmul.f32 %v10750_v47, %v6294_v48 }
0x1098   :  { %6298 = vrot.lane.b32.xlu1 %v6296_v51, %s10826_s11 }
0x110a   :  { %v6299_v62 = vpop.permute.xlu1 %6298 }
0x110b   :  { %v11774_v63 = vadd.f32 %v6299_v62, %v6291_v44 }
0x110d   :  { %10751 = vtanh.f32 %v11774_v63 }
0x1117   :  { %v10752_v19 = vpop.eup %10751 }
0x1118   :  { %6304 = vrot.lane.b32.xlu0 %v10752_v19, %s10836_s3 }
0x118a   :  { %v6305_v2 = vpop.permute.xlu0 %6304 }
0x118b   :  { %v11778_v3 = vmul.f32 %v10750_v47, %v6305_v2 }
0x118d   :  { %v6320_v4 = vrot.slane %v11778_v3, %v10909_v9 }
0x118f   :  { %v6321_v10 = vcombine.high %v6320_v4, %v6320_v4  ;;  %v6328_v13 = vrot.slane %v6320_v4, %v10909_v9 }
0x1191   :  { %v6339_v14 = vrot.slane %v6328_v13, %v11144_v31  ;;  %v6335_v15 = vrot.slane %v6321_v10, %v10909_v9 }
0x1193   :  { %6340 = vrot.lane.b32.xlu0 %v6339_v14, %s10826_s11  ;;  %v6808_v11 = vrot.slane %v6335_v15, %v11144_v31 }
0x1195   :  { %6809 = vrot.lane.b32.xlu1 %v6808_v11, %s10826_s11 }
0x1197   :  { %174 = vperm.xlu0 %10699, %v78_v17  }
0x1199   :  { %112 = vperm.xlu1 %10698, %v78_v17  }
0x119d   :  { %10700 = vset.pattern.permute.xlu1 %v10833_v7 }
0x119e   :  { %232 = vperm.xlu1 %10700, %v78_v17  }
0x11a2   :  { %10701 = vset.pattern.permute.xlu1 %v10835_v53 }
0x11a3   :  { %290 = vperm.xlu1 %10701, %v78_v17  }
0x11a7   :  { %10702 = vset.pattern.permute.xlu1 %v10832_v6 }
0x1205   :  { %v6341_v20 = vpop.permute.xlu0 %6340 }
0x1206   :  { %v6342_v21 = vsel %vm356_vm2, %v6341_v20, 0 }
0x1207   :  { %v11795_v30 = vand.u32 4294901760, %v6342_v21  ;;  %v6810_v32 = vpop.permute.xlu1 %6809 }
0x1208   :  { %v6811_v12 = vsel %vm356_vm2, %v6810_v32, 0 }
0x1209   :  { %v6410_v33 = vsub.f32 %v6342_v21, %v11795_v30  ;;  %v11799_v34 = vand.u32 4294901760, %v6811_v12 }
0x120b   :  { %v6411_v35 = vand.u32 4294901760, %v6410_v33  ;;  %v6879_v27 = vsub.f32 %v6811_v12, %v11799_v34 }
0x120d   :  { %v6412_v37 = vsub.f32 %v6410_v33, %v6411_v35  ;;  %v6880_v38 = vand.u32 4294901760, %v6879_v27 }
0x120f   :  { %v6413_v52 = vand.u32 4294901760, %v6412_v37  ;;  %v6881_v39 = vsub.f32 %v6879_v27, %v6880_v38 }
0x1211   :  { %v6882_v6 = vand.u32 4294901760, %v6881_v39  ;;  %9672 = vmatmul.mubr.f32.vlgmr.msra.gmra.mrb[12].mxu0 %v6413_v52 }
0x1212   :  { %10367 = vmatpush3.bf16.msra.mxu0 %v11006_v60  ;;  %9682 = vmatprep.mubr.msk.f32.mxu0 %vm10830_vm1, %v10829_v1 }
0x1213   :  { %9738 = vmatmul.mubr.f32.vlgmr.msra.gmra.mrb[12].mxu1 %v6882_v6  ;;  %10368 = vmatprep.subr.bf16.mxu0 %v10828_v0 }
0x1214   :  { %10403 = vmatpush3.bf16.msra.mxu1 %v11015_v8  ;;  %9748 = vmatprep.mubr.msk.f32.mxu1 %vm10830_vm1, %v10829_v1 }
0x1215   :  { %10404 = vmatprep.subr.bf16.mxu1 %v10828_v0 }
0x1216   :  { %10370 = vmatpush3.bf16.msra.mxu0 %v11020_v16  ;;  %v175_v45 = vpop.permute.xlu0 %174 }
0x1217   :  { %10371 = vmatprep.subr.bf16.mxu0 %v10828_v0  ;;  %v197_v48 = vmul.f32 %v11164_v5, %v175_v45 }
0x1218   :  { %10406 = vmatpush3.bf16.msra.mxu1 %v11036_v28  ;;  %v113_v40 = vpop.permute.xlu1 %112 }
0x1219   :  { %9683 = vmatmul.mubr.f32.vlgmr.msra.gmra.mrb[12].mxu0 %v11795_v30  ;;  %10407 = vmatprep.subr.bf16.mxu1 %v10828_v0  ;;  %v139_v47 = vmul.f32 %v11155_v43, %v113_v40 }
0x121a   :  { %10373 = vmatpush3.bf16.msra.mxu0 %v11033_v22  ;;  %9693 = vmatprep.mubr.msk.f32.mxu0 %vm10830_vm1, %v10829_v1 }
0x121b   :  { %9749 = vmatmul.mubr.f32.vlgmr.msra.gmra.mrb[12].mxu1 %v11799_v34  ;;  %10374 = vmatprep.subr.bf16.mxu0 %v10828_v0 }
0x121c   :  { %10409 = vmatpush3.bf16.msra.mxu1 %v11043_v29  ;;  %9759 = vmatprep.mubr.msk.f32.mxu1 %vm10830_vm1, %v10829_v1 }
0x121d   :  { %10410 = vmatprep.subr.bf16.mxu1 %v10828_v0  ;;  %v233_v44 = vpop.permute.xlu1 %232 }
0x121e   :  { %10376 = vmatpush3.bf16.msra.mxu0 %v11047_v36  ;;  %v255_v62 = vmul.f32 %v11161_v56, %v233_v44 }
0x121f   :  { %10377 = vmatprep.subr.bf16.mxu0 %v10828_v0 }
0x1220   :  { %10412 = vmatpush3.bf16.msra.mxu1 %v11057_v41 }
0x1221   :  { %9694 = vmatmul.mubr.f32.vlgmr.msra.gmra.mrb[12].mxu0 %v6410_v33  ;;  %10413 = vmatprep.subr.bf16.mxu1 %v10828_v0 }
0x1222   :  { %10379 = vmatpush3.bf16.msra.mxu0 %v11470_v54  ;;  %9704 = vmatprep.mubr.msk.f32.mxu0 %vm10830_vm1, %v10829_v1  ;;  %v291_v19 = vpop.permute.xlu1 %290 }
0x1223   :  { %9760 = vmatmul.mubr.f32.vlgmr.msra.gmra.mrb[12].mxu1 %v6879_v27  ;;  %10380 = vmatprep.subr.bf16.mxu0 %v10828_v0  ;;  %v313_v2 = vmul.f32 %v11168_v59, %v291_v19 }
0x1224   :  { %10415 = vmatpush3.bf16.msra.mxu1 %v11479_v55  ;;  %9770 = vmatprep.mubr.msk.f32.mxu1 %vm10830_vm1, %v10829_v1 }
0x1225   :  { %10416 = vmatprep.subr.bf16.mxu1 %v10828_v0 }
0x1226   :  { %10382 = vmatpush3.bf16.msra.mxu0 %v11488_v58 }
0x1227   :  { %10383 = vmatprep.subr.bf16.mxu0 %v10828_v0 }
0x1228   :  { %10418 = vmatpush3.bf16.msra.mxu1 %v11495_v61 }
0x1229   :  { %9705 = vmatmul.mubr.f32.vlgmr.msra.gmra.mrb[12].mxu0 %v6411_v35  ;;  %10419 = vmatprep.subr.bf16.mxu1 %v10828_v0 }
0x122a   :  { %10385 = vmatpush3.bf16.msra.mxu0 %v11077_v42  ;;  %9715 = vmatprep.mubr.msk.f32.mxu0 %vm10830_vm1, %v10829_v1 }
0x122b   :  { %9771 = vmatmul.mubr.f32.vlgmr.msra.gmra.mrb[12].mxu1 %v6880_v38  ;;  %10386 = vmatprep.subr.bf16.mxu0 %v10828_v0 }
0x122c   :  { %10421 = vmatpush3.bf16.msra.mxu1 %v11091_v23  ;;  %9781 = vmatprep.mubr.msk.f32.mxu1 %vm10830_vm1, %v10829_v1 }
0x122d   :  { %10422 = vmatprep.subr.bf16.mxu1 %v10828_v0 }
0x122e   :  { %10388 = vmatpush3.bf16.msra.mxu0 %v11097_v24 }
0x122f   :  { %10389 = vmatprep.subr.bf16.mxu0 %v10828_v0 }
0x1230   :  { %10424 = vmatpush3.bf16.msra.mxu1 %v11107_v25 }
0x1231   :  { %9716 = vmatmul.mubr.f32.vlgmr.msra.gmra.mrb[12].mxu0 %v11795_v30  ;;  %10425 = vmatprep.subr.bf16.mxu1 %v10828_v0 }
0x1232   :  { %10391 = vmatpush3.bf16.msra.mxu0 %v11470_v54  ;;  %9726 = vmatprep.mubr.msk.f32.mxu0 %vm10830_vm1, %v10829_v1 }
0x1233   :  { %9782 = vmatmul.mubr.f32.vlgmr.msra.gmra.mrb[12].mxu1 %v11799_v34  ;;  %10392 = vmatprep.subr.bf16.mxu0 %v10828_v0 }
0x1234   :  { %10427 = vmatpush3.bf16.msra.mxu1 %v11479_v55  ;;  %9792 = vmatprep.mubr.msk.f32.mxu1 %vm10830_vm1, %v10829_v1 }
0x1235   :  { %10428 = vmatprep.subr.bf16.mxu1 %v10828_v0 }
0x1236   :  { %10394 = vmatpush3.bf16.msra.mxu0 %v11488_v58 }
0x1237   :  { %10431 = vmatprep.subr.bf16.mxu0 %v10828_v0 }
0x1238   :  { %10430 = vmatpush3.bf16.msra.mxu1 %v11495_v61 }
0x1239   :  { %9727 = vmatmul.mubr.f32.vlgmr.msra.gmra.mrb[12].mxu0 %v11795_v30  ;;  %10467 = vmatprep.subr.bf16.mxu1 %v10828_v0 }
0x123a   :  { %10433 = vmatpush3.bf16.msra.mxu0 %v11470_v54  ;;  %9803 = vmatprep.mubr.msk.f32.mxu0 %vm10830_vm1, %v10829_v1  ;;  %v147_v54 = vadd.f32 %v139_v47, %v11157_v50 }
0x123b   :  { %9793 = vmatmul.mubr.f32.vlgmr.msra.gmra.mrb[12].mxu1 %v11799_v34  ;;  %10434 = vmatprep.subr.bf16.mxu0 %v10828_v0 }
0x123c   :  { %10469 = vmatpush3.bf16.msra.mxu1 %v11479_v55  ;;  %9869 = vmatprep.mubr.msk.f32.mxu1 %vm10830_vm1, %v10829_v1  ;;  %v205_v51 = vadd.f32 %v197_v48, %v147_v54  ;;  %v79_v54 = vld [vmem:[%s12051_s0 + $0xe] sm:$0x3] }
0x123d   :  { %10470 = vmatprep.subr.bf16.mxu1 %v10828_v0 }
0x123e   :  { %10436 = vmatpush3.bf16.msra.mxu0 %v11488_v58  ;;  %v263_v55 = vadd.f32 %v255_v62, %v205_v51 }
0x123f   :  { %10437 = vmatprep.subr.bf16.mxu0 %v10828_v0 }
0x1240   :  { %10472 = vmatpush3.bf16.msra.mxu1 %v11495_v61  ;;  %v321_v4 = vadd.f32 %v313_v2, %v263_v55 }
0x1241   :  { %10473 = vmatprep.subr.bf16.mxu1 %v10828_v0 }
0x1242   :  { %329 = vst [vmem:[#allocation4 + $0xc] sm:$0x3] %v321_v4 }
0x1249   :  { %v7275_v11 = vld [vmem:[#allocation4 + $0xc] sm:$0x3] }
0x130c   :  { %v6801_v10 = vpop.f32.mrb[12].mxu0 }
0x130d   :  { %v9728_v13 = vpop.f32.mrb[13].mxu0 }
0x130e   :  { %v7270_v14 = vpop.f32.mrb[12].mxu1 }
0x130f   :  { %v7278_v58 = vrot.slane %v7270_v14, 7  ;;  %v9794_v15 = vpop.f32.mrb[13].mxu1 }
0x1311   :  { %v7279_v17 = vsel %vm130_vm3, %v7278_v58, %v6801_v10 }
0x1312   :  { %v7281_v20 = vadd.f32 %v7279_v17, %v7275_v11  ;;  %v10773_v17 = vld [vmem:[%s12053_s2] sm:$0xff]  }
0x1314   :  { %10753 = vtanh.f32 %v7281_v20  ;;  %v8369_v21 = vmul.f32 -1.442695, %v7281_v20 }
0x1316   :  { %10755 = vpow2.f32 %v8369_v21 }
0x131e   :  { %v10754_v61 = vpop.eup %10753 }
0x131f   :  { %7291 = vrot.lane.b32.xlu0 %v10754_v61, %s10836_s3 }
0x1320   :  { %v10756_v30 = vpop.eup %10755 }
0x1321   :  { %v7285_v32 = vadd.f32 1.0, %v10756_v30 }
0x1323   :  { %10757 = vrcp.f32 %v7285_v32 }
0x132d   :  { %v10758_v12 = vpop.eup %10757 }
0x132e   :  { %v7289_v35 = vmul.f32 %v10758_v12, %v11774_v63 }
0x1391   :  { %v7292_v33 = vpop.permute.xlu0 %7291 }
0x1392   :  { %v7294_v34 = vmul.f32 %v10758_v12, %v7292_v33 }
0x1394   :  { %7296 = vrot.lane.b32.xlu1 %v7294_v34, %s10826_s11 }
0x1406   :  { %v7297_v27 = vpop.permute.xlu1 %7296 }
0x1407   :  { %v11889_v37 = vadd.f32 %v7297_v27, %v7289_v35  ;;  %v8371_v27 = vld [vmem:[%s12055_s4] ss:$0 sm:$0xff] }
0x1409   :  { %10759 = vtanh.f32 %v11889_v37 }
0x1413   :  { %v10760_v38 = vpop.eup %10759 }
0x1414   :  { %7302 = vrot.lane.b32.xlu0 %v10760_v38, %s10836_s3 }
0x1486   :  { %v7303_v52 = vpop.permute.xlu0 %7302 }
0x1487   :  { %v11893_v39 = vmul.f32 %v10758_v12, %v7303_v52 }
0x1489   :  { %v7318_v6 = vrot.slane %v11893_v39, %v10909_v9 }
0x148b   :  { %v7319_v40 = vcombine.high %v7318_v6, %v7318_v6  ;;  %v7326_v45 = vrot.slane %v7318_v6, %v10909_v9 }
0x148d   :  { %v7337_v47 = vrot.slane %v7326_v45, %v11144_v31  ;;  %v7333_v63 = vrot.slane %v7319_v40, %v10909_v9 }
0x148f   :  { %7338 = vrot.lane.b32.xlu0 %v7337_v47, %s10826_s11  ;;  %v7806_v48 = vrot.slane %v7333_v63, %v11144_v31 }
0x1491   :  { %7807 = vrot.lane.b32.xlu1 %v7806_v48, %s10826_s11 }
0x1493   :  { %178 = vperm.xlu0 %10699, %v79_v54  }
0x1495   :  { %117 = vperm.xlu1 %10702, %v79_v54  }
0x1497   :  { %10704 = vset.pattern.permute.xlu0 %v10835_v53 }
0x1498   :  { %294 = vperm.xlu0 %10704, %v79_v54  }
0x1499   :  { %10703 = vset.pattern.permute.xlu1 %v10833_v7 }
0x149a   :  { %236 = vperm.xlu1 %10703, %v79_v54  }
0x1501   :  { %v7339_v51 = vpop.permute.xlu0 %7338 }
0x1502   :  { %v7340_v9 = vsel %vm356_vm2, %v7339_v51, 0 }
0x1503   :  { %v11909_v44 = vand.u32 4294901760, %v7340_v9  ;;  %v7808_v31 = vpop.permute.xlu1 %7807 }
0x1504   :  { %v7809_v62 = vsel %vm356_vm2, %v7808_v31, 0 }
0x1505   :  { %v7408_v55 = vsub.f32 %v7340_v9, %v11909_v44  ;;  %v11913_v19 = vand.u32 4294901760, %v7809_v62 }
0x1507   :  { %v7409_v2 = vand.u32 4294901760, %v7408_v55  ;;  %v7877_v4 = vsub.f32 %v7809_v62, %v11913_v19 }
0x1509   :  { %v7410_v53 = vsub.f32 %v7408_v55, %v7409_v2  ;;  %v7878_v10 = vand.u32 4294901760, %v7877_v4 }
0x150b   :  { %v7411_v13 = vand.u32 4294901760, %v7410_v53  ;;  %v7879_v7 = vsub.f32 %v7877_v4, %v7878_v10 }
0x150d   :  { %v7880_v14 = vand.u32 4294901760, %v7879_v7  ;;  %9804 = vmatmul.mubr.f32.vlgmr.msra.gmra.mrb[14].mxu0 %v7411_v13 }
0x150e   :  { %10439 = vmatpush3.bf16.msra.mxu0 %v11006_v60  ;;  %9814 = vmatprep.mubr.msk.f32.mxu0 %vm10830_vm1, %v10829_v1 }
0x150f   :  { %9870 = vmatmul.mubr.f32.vlgmr.msra.gmra.mrb[14].mxu1 %v7880_v14  ;;  %10440 = vmatprep.subr.bf16.mxu0 %v10828_v0 }
0x1510   :  { %10475 = vmatpush3.bf16.msra.mxu1 %v11015_v8  ;;  %9880 = vmatprep.mubr.msk.f32.mxu1 %vm10830_vm1, %v10829_v1 }
0x1511   :  { %10476 = vmatprep.subr.bf16.mxu1 %v10828_v0 }
0x1512   :  { %10442 = vmatpush3.bf16.msra.mxu0 %v11020_v16  ;;  %v179_v58 = vpop.permute.xlu0 %178 }
0x1513   :  { %10443 = vmatprep.subr.bf16.mxu0 %v10828_v0  ;;  %v198_v8 = vmul.f32 %v11164_v5, %v179_v58 }
0x1514   :  { %10478 = vmatpush3.bf16.msra.mxu1 %v11036_v28  ;;  %v118_v60 = vpop.permute.xlu1 %117 }
0x1515   :  { %v140_v15 = vmul.f32 %v11155_v43, %v118_v60  ;;  %9815 = vmatmul.mubr.f32.vlgmr.msra.gmra.mrb[14].mxu0 %v11909_v44  ;;  %10479 = vmatprep.subr.bf16.mxu1 %v10828_v0 }
0x1516   :  { %10445 = vmatpush3.bf16.msra.mxu0 %v11033_v22  ;;  %9825 = vmatprep.mubr.msk.f32.mxu0 %vm10830_vm1, %v10829_v1 }
0x1517   :  { %v148_v16 = vadd.f32 %v140_v15, %v11157_v50  ;;  %9881 = vmatmul.mubr.f32.vlgmr.msra.gmra.mrb[14].mxu1 %v11913_v19  ;;  %10446 = vmatprep.subr.bf16.mxu0 %v10828_v0  ;;  %v295_v28 = vpop.permute.xlu0 %294 }
0x1518   :  { %10481 = vmatpush3.bf16.msra.mxu1 %v11043_v29  ;;  %9891 = vmatprep.mubr.msk.f32.mxu1 %vm10830_vm1, %v10829_v1  ;;  %v314_v50 = vmul.f32 %v11168_v59, %v295_v28 }
0x1519   :  { %v206_v43 = vadd.f32 %v198_v8, %v148_v16  ;;  %v237_v11 = vpop.permute.xlu1 %236  ;;  %10482 = vmatprep.subr.bf16.mxu1 %v10828_v0 }
0x151a   :  { %v256_v22 = vmul.f32 %v11161_v56, %v237_v11  ;;  %10448 = vmatpush3.bf16.msra.mxu0 %v11047_v36  ;;  %v10774_v36 = vld [vmem:[%s12053_s2 + $0x10] sm:$0xff]   ;;  %v10776_v56 = vld [vmem:[%s12053_s2 + $0x18] sm:$0xff]  }
0x151b   :  { %10449 = vmatprep.subr.bf16.mxu0 %v10828_v0 }
0x151c   :  { %v264_v5 = vadd.f32 %v256_v22, %v206_v43  ;;  %10484 = vmatpush3.bf16.msra.mxu1 %v11057_v41  ;;  %v10775_v41 = vld [vmem:[%s12053_s2 + $0x8] sm:$0xff]  }
0x151d   :  { %9826 = vmatmul.mubr.f32.vlgmr.msra.gmra.mrb[14].mxu0 %v7408_v55  ;;  %10485 = vmatprep.subr.bf16.mxu1 %v10828_v0 }
0x151e   :  { %v322_v29 = vadd.f32 %v314_v50, %v264_v5  ;;  %10451 = vmatpush3.bf16.msra.mxu0 %v10773_v17  ;;  %9836 = vmatprep.mubr.msk.f32.mxu0 %vm10830_vm1, %v10829_v1 }
0x151f   :  { %9892 = vmatmul.mubr.f32.vlgmr.msra.gmra.mrb[14].mxu1 %v7877_v4  ;;  %10452 = vmatprep.subr.bf16.mxu0 %v10828_v0 }
0x1520   :  { %330 = vst [vmem:[#allocation4 + $0xe] sm:$0x3] %v322_v29  ;;  %10487 = vmatpush3.bf16.msra.mxu1 %v10774_v36  ;;  %9902 = vmatprep.mubr.msk.f32.mxu1 %vm10830_vm1, %v10829_v1 }
0x1521   :  { %10488 = vmatprep.subr.bf16.mxu1 %v10828_v0 }
0x1522   :  { %10454 = vmatpush3.bf16.msra.mxu0 %v10775_v41 }
0x1523   :  { %10455 = vmatprep.subr.bf16.mxu0 %v10828_v0 }
0x1524   :  { %10490 = vmatpush3.bf16.msra.mxu1 %v10776_v56 }
0x1525   :  { %9837 = vmatmul.mubr.f32.vlgmr.msra.gmra.mrb[14].mxu0 %v7409_v2  ;;  %10491 = vmatprep.subr.bf16.mxu1 %v10828_v0 }
0x1526   :  { %10457 = vmatpush3.bf16.msra.mxu0 %v11077_v42  ;;  %9847 = vmatprep.mubr.msk.f32.mxu0 %vm10830_vm1, %v10829_v1 }
0x1527   :  { %9903 = vmatmul.mubr.f32.vlgmr.msra.gmra.mrb[14].mxu1 %v7878_v10  ;;  %10458 = vmatprep.subr.bf16.mxu0 %v10828_v0  ;;  %v8273_v20 = vld [vmem:[#allocation4 + $0xe] sm:$0x3] }
0x1528   :  { %10493 = vmatpush3.bf16.msra.mxu1 %v11091_v23  ;;  %9913 = vmatprep.mubr.msk.f32.mxu1 %vm10830_vm1, %v10829_v1 }
0x1529   :  { %10494 = vmatprep.subr.bf16.mxu1 %v10828_v0 }
0x152a   :  { %10460 = vmatpush3.bf16.msra.mxu0 %v11097_v24 }
0x152b   :  { %10461 = vmatprep.subr.bf16.mxu0 %v10828_v0 }
0x152c   :  { %10496 = vmatpush3.bf16.msra.mxu1 %v11107_v25 }
0x152d   :  { %9848 = vmatmul.mubr.f32.vlgmr.msra.gmra.mrb[14].mxu0 %v11909_v44  ;;  %10497 = vmatprep.subr.bf16.mxu1 %v10828_v0 }
0x152e   :  { %10463 = vmatpush3.bf16.msra.mxu0 %v10773_v17  ;;  %9858 = vmatprep.mubr.msk.f32.mxu0 %vm10830_vm1, %v10829_v1 }
0x152f   :  { %9914 = vmatmul.mubr.f32.vlgmr.msra.gmra.mrb[14].mxu1 %v11913_v19  ;;  %10464 = vmatprep.subr.bf16.mxu0 %v10828_v0 }
0x1530   :  { %10499 = vmatpush3.bf16.msra.mxu1 %v10774_v36  ;;  %9924 = vmatprep.mubr.msk.f32.mxu1 %vm10830_vm1, %v10829_v1 }
0x1531   :  { %10500 = vmatprep.subr.bf16.mxu1 %v10828_v0 }
0x1532   :  { %10466 = vmatpush3.bf16.msra.mxu0 %v10775_v41 }
0x1534   :  { %10502 = vmatpush3.bf16.msra.mxu1 %v10776_v56 }
0x1535   :  { %9859 = vmatmul.mubr.f32.vlgmr.msra.gmra.mrb[14].mxu0 %v11909_v44 }
0x1537   :  { %9925 = vmatmul.mubr.f32.vlgmr.msra.gmra.mrb[14].mxu1 %v11913_v19 }
0x1608   :  { %v7799_v42 = vpop.f32.mrb[14].mxu0 }
0x1609   :  { %v9860_v23 = vpop.f32.mrb[15].mxu0 }
0x160a   :  { %v8268_v24 = vpop.f32.mrb[14].mxu1 }
0x160b   :  { %v8276_v25 = vrot.slane %v8268_v24, 7  ;;  %v9926_v59 = vpop.f32.mrb[15].mxu1 }
0x160d   :  { %v8277_v61 = vsel %vm130_vm3, %v8276_v25, %v7799_v42 }
0x160e   :  { %v8279_v21 = vadd.f32 %v8277_v61, %v8273_v20 }
0x1610   :  { %10761 = vtanh.f32 %v8279_v21  ;;  %v8370_v0 = vmul.f32 -1.442695, %v8279_v21 }
0x1612   :  { %10763 = vpow2.f32 %v8370_v0 }
0x161a   :  { %v10762_v30 = vpop.eup %10761 }
0x161b   :  { %8289 = vrot.lane.b32.xlu1 %v10762_v30, %s10836_s3 }
0x161c   :  { %v10764_v32 = vpop.eup %10763 }
0x161d   :  { %v8283_v12 = vadd.f32 1.0, %v10764_v32 }
0x161f   :  { %10765 = vrcp.f32 %v8283_v12 }
0x1629   :  { %v10766_v33 = vpop.eup %10765 }
0x162a   :  { %v8287_v38 = vmul.f32 %v10766_v33, %v11889_v37 }
0x168d   :  { %v8290_v34 = vpop.permute.xlu1 %8289 }
0x168e   :  { %v8292_v35 = vmul.f32 %v10766_v33, %v8290_v34 }
0x1690   :  { %8294 = vrot.lane.b32.xlu1 %v8292_v35, %s10826_s11 }
0x1694   :  { %8325 = vrot.lane.b32.xlu1 %v8371_v27, %s10837_s13 }
0x1702   :  { %v8295_v52 = vpop.permute.xlu1 %8294 }
0x1703   :  { %v8297_v6 = vadd.f32 %v8295_v52, %v8287_v38 }
0x1705   :  { %10767 = vtanh.f32 %v8297_v6 }
0x1706   :  { %v8326_v47 = vpop.permute.xlu1 %8325 }
0x170f   :  { %v10768_v40 = vpop.eup %10767 }
0x1710   :  { %8300 = vrot.lane.b32.xlu0 %v10768_v40, %s10836_s3 }
0x1782   :  { %v8301_v45 = vpop.permute.xlu0 %8300 }
0x1783   :  { %v8303_v63 = vmul.f32 %v10766_v33, %v8301_v45 }
0x1785   :  { %v8328_v48 = vmul.f32 %v8326_v47, %v8303_v63 }
0x1787   :  { %8330 = vrot.lane.b32.xlu0 %v8328_v48, %s10826_s11 }
0x178b   :  { %1319 = vrot.lane.b32.xlu0 %v11180_v49, %s10826_s11 }
0x178f   :  { %2317 = vrot.lane.b32.xlu0 %v11296_v26, %s10826_s11 }
0x1793   :  { %3315 = vrot.lane.b32.xlu0 %v11411_v57, %s10826_s11 }
0x1797   :  { %4313 = vrot.lane.b32.xlu0 %v11547_v46, %s10826_s11 }
0x179b   :  { %5311 = vrot.lane.b32.xlu0 %v11662_v18, %s10826_s11 }
0x179f   :  { %6309 = vrot.lane.b32.xlu0 %v11778_v3, %s10826_s11 }
0x17a3   :  { %7307 = vrot.lane.b32.xlu0 %v11893_v39, %s10826_s11 }
0x17a7   :  { %8305 = vrot.lane.b32.xlu0 %v8303_v63, %s10826_s11 }
0x17ab   :  { %8312 = vrot.lane.b32.xlu0 %v8297_v6, %s10837_s13 }
0x17f9   :  { %v8331_v49 = vpop.permute.xlu0 %8330 }
0x17fa   :  { %v8333_v26 = vsel %vm45_vm0, %v8331_v49, 0.0 }
0x17fb   :  { %8334 = vadd.xlane.f32.xlu1 %v8333_v26 }
0x17fd   :  { %v1320_v57 = vpop.permute.xlu0 %1319 }
0x17fe   :  { %1323 = vst.msk [vmem:[#allocation9] sm:$0x3] %vm45_vm0, %v1320_v57 }
0x1801   :  { %v2318_v46 = vpop.permute.xlu0 %2317 }
0x1802   :  { %2321 = vst.msk [vmem:[#allocation9 + $0x2] sm:$0x3] %vm45_vm0, %v2318_v46 }
0x1805   :  { %v3316_v18 = vpop.permute.xlu0 %3315 }
0x1806   :  { %3319 = vst.msk [vmem:[#allocation9 + $0x4] sm:$0x3] %vm45_vm0, %v3316_v18 }
0x1809   :  { %v4314_v1 = vpop.permute.xlu0 %4313 }
0x180a   :  { %4317 = vst.msk [vmem:[#allocation9 + $0x6] sm:$0x3] %vm45_vm0, %v4314_v1 }
0x180d   :  { %v5312_v3 = vpop.permute.xlu0 %5311 }
0x180e   :  { %5315 = vst.msk [vmem:[#allocation9 + $0x8] sm:$0x3] %vm45_vm0, %v5312_v3 }
0x1811   :  { %v6310_v37 = vpop.permute.xlu0 %6309 }
0x1812   :  { %6313 = vst.msk [vmem:[#allocation9 + $0xa] sm:$0x3] %vm45_vm0, %v6310_v37 }
0x1815   :  { %v7308_v39 = vpop.permute.xlu0 %7307 }
0x1816   :  { %7311 = vst.msk [vmem:[#allocation9 + $0xc] sm:$0x3] %vm45_vm0, %v7308_v39 }
0x1819   :  { %v8306_v54 = vpop.permute.xlu0 %8305 }
0x181a   :  { %8309 = vst.msk [vmem:[#allocation9 + $0xe] sm:$0x3] %vm45_vm0, %v8306_v54  ;;  %8310 = vst.msk [vmem:[#allocation2] sm:$0x3] %vm45_vm0, %v8306_v54 }
0x181b   :  { %10810 = shalt.err (!%p10807_p12)
}
0x181c   :  { %s10811_s18 = scalar_lea.hbm %s12057_s6, 256 }
0x181d   :  { %p10812_p13 = scmp.ne.s32.totalorder %s12057_s6, %s10811_s18  ;;  %p10815_p0 = scmp.lt.u32.totalorder %s10811_s18, %s12057_s6 }
0x181f   :  { %p10817_p1 = pnand %p10815_p0, %p10812_p13 }
0x1821   :  { %10820 = shalt.err (!%p10817_p1)
}
0x1822   :  { %8352 = dma.vmem_to_hbm [thread:$0]  %s8347_s1, 256, %s12057_s6, [#allocation8], %s10826_s11, %s10826_s11, %s10827_s12   ;;  %v8313_v51 = vpop.permute.xlu0 %8312 }
0x1823   :  { %8315 = vst.msk [vmem:[#allocation3] sm:$0x3] %vm45_vm0, %v8313_v51  ;;  %v8337_v9 = vstv %s12056_s5 }
0x1888   :  { %v8335_v44 = vpop.xlane.xlu1 %8334 }
0x1889   :  { %v8338_v31 = vadd.f32 %v8337_v9, %v8335_v44 }
0x188b   :  { %8340 = vst.msk [vmem:[%s12058_s7] sm:$0x3] %vm48_vm4, %v8338_v31 }
0x188c   :  { %10823 = dma.done.wait [#allocation8], 256  }
0x188d   :  { %10824 = vsyncadd [#allocation8], 4294967040 }
0x188e   :  { %8360 = vsyncpa [#allocation7], 1 }
0x188f   :  { %8361 = vsyncpa [#allocation8], 1 }

</bundles_post_ra>
